<compile_context>
chip_gen: v7x
topology: tpu7x:2x2x1
jax: 0.10.0
libtpu: 0.0.40
codegen_flags: <defaults>
</compile_context>

<pallas_src>
import functools

import jax
import jax.numpy as jnp
import numpy as np
from jax import lax
from jax.experimental import pallas as pl
from jax.experimental.pallas import tpu as pltpu

EMBEDDING_DIM = 64
HIDDEN_SIZE = 128
NUM_LAYERS = 1

_HIGHEST = jax.lax.Precision.HIGHEST


def _round_up(x, m):
    return ((x + m - 1) // m) * m


def _largest_divisor_leq(n, cap):
    for d in range(min(n, cap), 0, -1):
        if n % d == 0:
            return d
    return 1


def _pick_row_tile(rows_pad):
    for rt in (512, 256, 128, 64, 32, 16, 8):
        if rows_pad % rt == 0:
            return rt
    return 8


# -----------------------------------------------------------------------------
# Kernel 1: sequential LSTM recurrence, streamed over (batch tiles, time chunks).
# -----------------------------------------------------------------------------
def _lstm_recurrence_kernel(gx_ref, whh_ref, out_ref, cn_ref, h_ref, c_ref):
    # gx_ref : (TC, BT, 4H)  streamed chunk of precomputed x@W_ih^T + b_ih + b_hh
    # whh_ref: (H, 4H)       W_hh^T (constant-index, stays resident in VMEM)
    # out_ref: (TC, BT, H)   hidden states for this (time chunk, batch tile)
    # cn_ref : (BT, H)       final cell state for this batch tile
    # h_ref/c_ref: (BT, H)   recurrent carry, persists across the time grid axis
    t_idx = pl.program_id(1)

    @pl.when(t_idx == 0)
    def _():
        h_ref[...] = jnp.zeros_like(h_ref)
        c_ref[...] = jnp.zeros_like(c_ref)

    TC = gx_ref.shape[0]
    H = out_ref.shape[2]
    whh = whh_ref[...]

    def step(t, carry):
        h, c = carry
        gates = gx_ref[t].astype(jnp.float32) + jnp.dot(
            h, whh, preferred_element_type=jnp.float32)          # (BT, 4H)
        i_g = jax.nn.sigmoid(gates[:, 0 * H:1 * H])
        f_g = jax.nn.sigmoid(gates[:, 1 * H:2 * H])
        g_g = jnp.tanh(gates[:, 2 * H:3 * H])
        o_g = jax.nn.sigmoid(gates[:, 3 * H:4 * H])
        c_new = f_g * c + i_g * g_g
        h_new = o_g * jnp.tanh(c_new)
        out_ref[t] = h_new
        return (h_new, c_new)

    # Chunk length is <= 32 by construction: fully unroll so adjacent steps'
    # loads/stores/EUP work can overlap (only h/c are serially dependent).
    h_fin, c_fin = lax.fori_loop(0, TC, step, (h_ref[...], c_ref[...]),
                                 unroll=True)
    h_ref[...] = h_fin
    c_ref[...] = c_fin
    cn_ref[...] = c_fin


# -----------------------------------------------------------------------------
# Kernel 2: folded head projection out = x @ W' + b', tiled over rows and vocab.
# -----------------------------------------------------------------------------
def _head_projection_kernel(x_ref, w_ref, b_ref, out_ref):
    out_ref[...] = jnp.dot(x_ref[...], w_ref[...],
                           preferred_element_type=jnp.float32) + b_ref[...]


def generate_model_lstm_forward(word_ids, params, lstm_hidden=None):
    """JAX/Pallas equivalent of Generate_model_lstm.forward.

    word_ids: (B, T) int32
    returns (out, (h_n, c_n)) with out (B, T, V), h_n/c_n (NUM_LAYERS, B, H).
    """
    # TODO(synk): a non-None lstm_hidden initial state is not wired into the
    # recurrence (it always starts from zeros, matching PyTorch's default).
    assert lstm_hidden is None

    emb = params["embedding"]            # (V, E)
    B, T = word_ids.shape
    V = emb.shape[0]
    E, H = EMBEDDING_DIM, HIDDEN_SIZE

    Bp = max(8, _round_up(B, 8))                         # pad batch to sublanes
    BT = next(bt for bt in (32, 24, 16, 8) if Bp % bt == 0)  # batch tile (<=32)
    TC = _largest_divisor_leq(T, 32)                     # time chunk (<=32)
    NB, NT = Bp // BT, T // TC

    # ---- glue: embedding gather + hoisted input projection ------------------
    embedded = jnp.take(emb, word_ids, axis=0)           # (B, T, E)
    wih_t = params["w_ih"].T                             # (E, 4H)
    b_comb = params["b_ih"] + params["b_hh"]             # (4H,)
    gates = jnp.dot(embedded.reshape(B * T, E), wih_t, precision=_HIGHEST)
    gates = (gates + b_comb).reshape(B, T, 4 * H)
    gates_x = jnp.transpose(gates, (1, 0, 2))            # (T, B, 4H)
    gates_x = jnp.pad(gates_x, ((0, 0), (0, Bp - B), (0, 0)))  # (T, Bp, 4H)
    gates_x = gates_x.astype(jnp.float32)
    # TODO(synk): optionally cast gates_x to bf16 to halve the streamed
    # HBM->VMEM DMA of the recurrence (small accuracy cost on pre-activations).

    whh_t = params["w_hh"].T.astype(jnp.float32)         # (H, 4H)

    # ---- Pallas kernel 1: streamed recurrence --------------------------------
    lstm_out_pad, c_n_pad = pl.pallas_call(
        _lstm_recurrence_kernel,
        out_shape=(
            jax.ShapeDtypeStruct((T, Bp, H), jnp.float32),
            jax.ShapeDtypeStruct((Bp, H), jnp.float32),
        ),
        grid=(NB, NT),
        in_specs=[
            pl.BlockSpec((TC, BT, 4 * H), lambda b, t: (t, b, 0)),  # gates_x
            pl.BlockSpec((H, 4 * H), lambda b, t: (0, 0)),          # W_hh^T
        ],
        out_specs=(
            pl.BlockSpec((TC, BT, H), lambda b, t: (t, b, 0)),      # lstm_out
            pl.BlockSpec((BT, H), lambda b, t: (b, 0)),             # c_n
        ),
        scratch_shapes=[pltpu.VMEM((BT, H), jnp.float32),           # h carry
                        pltpu.VMEM((BT, H), jnp.float32)],          # c carry
        compiler_params=pltpu.CompilerParams(
            dimension_semantics=("parallel", "arbitrary"),
            vmem_limit_bytes=32 * 1024 * 1024),
    )(gates_x, whh_t)

    h_n = lstm_out_pad[T - 1, :B][None]                  # (1, B, H)
    c_n = c_n_pad[:B][None]                              # (1, B, H)

    # ---- fold h2h into h2o:  out = x @ (Wh2h^T Wh2o^T) + (bh2h Wh2o^T + bh2o)
    wh2o_t = params["h2o_w"].T                           # (H, V)
    w_head = jnp.dot(params["h2h_w"].T, wh2o_t, precision=_HIGHEST)       # (H, V)
    b_head = jnp.dot(params["h2h_b"], wh2o_t, precision=_HIGHEST) \
        + params["h2o_b"]                                # (V,)

    # Only the real B batch rows, laid out (B, T, H) so the (B, T, V) logits
    # come out in final order and need no large transpose afterwards.
    lstm_bt = jnp.transpose(lstm_out_pad[:, :B], (1, 0, 2)).reshape(B * T, H)

    rows = B * T
    rows_pad = _round_up(rows, 8)
    RT = _pick_row_tile(rows_pad)                        # divides rows_pad
    if rows_pad != rows:
        lstm_bt = jnp.pad(lstm_bt, ((0, rows_pad - rows), (0, 0)))

    V_pad = _round_up(V, 128)
    TV = min(V_pad, 1024)                                # vocab tile
    V_pad = _round_up(V_pad, TV)
    w_head = jnp.pad(w_head, ((0, 0), (0, V_pad - V))).astype(jnp.float32)
    b_head = jnp.pad(b_head, (0, V_pad - V)).astype(jnp.float32)[None, :]

    # ---- Pallas kernel 2: folded head projection, row x vocab tiled ----------
    out_flat = pl.pallas_call(
        _head_projection_kernel,
        out_shape=jax.ShapeDtypeStruct((rows_pad, V_pad), jnp.float32),
        grid=(rows_pad // RT, V_pad // TV),
        in_specs=[
            pl.BlockSpec((RT, H), lambda i, j: (i, 0)),   # lstm_out rows
            pl.BlockSpec((H, TV), lambda i, j: (0, j)),   # folded head weight
            pl.BlockSpec((1, TV), lambda i, j: (0, j)),   # folded head bias
        ],
        out_specs=pl.BlockSpec((RT, TV), lambda i, j: (i, j)),
        compiler_params=pltpu.CompilerParams(
            dimension_semantics=("parallel", "parallel"),
            vmem_limit_bytes=32 * 1024 * 1024),
    )(lstm_bt, w_head, b_head)

    out = out_flat[:rows, :V].reshape(B, T, V)           # (B, T, V), no transpose
    return out, (h_n, c_n)


# -----------------------------------------------------------------------------
# Pure-JAX reference mirroring torch semantics (correctness check).
# -----------------------------------------------------------------------------
def _reference_forward(word_ids, params):
    emb = params["embedding"]
    embedded = jnp.take(emb, word_ids, axis=0)           # (B, T, E)
    B = word_ids.shape[0]
    H = HIDDEN_SIZE
    w_ih, w_hh = params["w_ih"], params["w_hh"]
    b_ih, b_hh = params["b_ih"], params["b_hh"]

    def step(carry, x_t):
        h, c = carry
        gates = (jnp.dot(x_t, w_ih.T, precision=_HIGHEST) + b_ih
                 + jnp.dot(h, w_hh.T, precision=_HIGHEST) + b_hh)
        i = jax.nn.sigmoid(gates[:, 0 * H:1 * H])
        f = jax.nn.sigmoid(gates[:, 1 * H:2 * H])
        g = jnp.tanh(gates[:, 2 * H:3 * H])
        o = jax.nn.sigmoid(gates[:, 3 * H:4 * H])
        c_new = f * c + i * g
        h_new = o * jnp.tanh(c_new)
        return (h_new, c_new), h_new

    h0 = jnp.zeros((B, H), jnp.float32)
    c0 = jnp.zeros((B, H), jnp.float32)
    (h_n, c_n), hs = lax.scan(step, (h0, c0),
                              jnp.transpose(embedded, (1, 0, 2)))
    lstm_out = jnp.transpose(hs, (1, 0, 2))              # (B, T, H)
    mid = jnp.dot(lstm_out, params["h2h_w"].T, precision=_HIGHEST) + params["h2h_b"]
    out = jnp.dot(mid, params["h2o_w"].T, precision=_HIGHEST) + params["h2o_b"]
    return out, (h_n[None], c_n[None])


def init_params(vocab_size, key):
    keys = jax.random.split(key, 9)
    s = 0.1
    return {
        "embedding": s * jax.random.normal(keys[0], (vocab_size, EMBEDDING_DIM), jnp.float32),
        "w_ih": s * jax.random.normal(keys[1], (4 * HIDDEN_SIZE, EMBEDDING_DIM), jnp.float32),
        "w_hh": s * jax.random.normal(keys[2], (4 * HIDDEN_SIZE, HIDDEN_SIZE), jnp.float32),
        "b_ih": s * jax.random.normal(keys[3], (4 * HIDDEN_SIZE,), jnp.float32),
        "b_hh": s * jax.random.normal(keys[4], (4 * HIDDEN_SIZE,), jnp.float32),
        "h2h_w": s * jax.random.normal(keys[5], (HIDDEN_SIZE, HIDDEN_SIZE), jnp.float32),
        "h2h_b": s * jax.random.normal(keys[6], (HIDDEN_SIZE,), jnp.float32),
        "h2o_w": s * jax.random.normal(keys[7], (vocab_size, HIDDEN_SIZE), jnp.float32),
        "h2o_b": s * jax.random.normal(keys[8], (vocab_size,), jnp.float32),
    }


if __name__ == "__main__":
    vocab_size = 256
    B, T = 2, 8

    key = jax.random.PRNGKey(0)
    k_params, k_ids = jax.random.split(key)
    params = init_params(vocab_size, k_params)
    word_ids = jax.random.randint(k_ids, (B, T), 0, vocab_size, dtype=jnp.int32)

    fwd = jax.jit(functools.partial(generate_model_lstm_forward, params=params))
    out, (h_n, c_n) = fwd(word_ids)
    jax.block_until_ready((out, h_n, c_n))

    ref_out, (ref_h, ref_c) = _reference_forward(word_ids, params)
    np.testing.assert_allclose(np.asarray(out), np.asarray(ref_out), atol=2e-4, rtol=2e-4)
    np.testing.assert_allclose(np.asarray(h_n), np.asarray(ref_h), atol=2e-4, rtol=2e-4)
    np.testing.assert_allclose(np.asarray(c_n), np.asarray(ref_c), atol=2e-4, rtol=2e-4)

    assert out.shape == (B, T, vocab_size)
    assert h_n.shape == (NUM_LAYERS, B, HIDDEN_SIZE)
    assert c_n.shape == (NUM_LAYERS, B, HIDDEN_SIZE)
    print("KERNEL_OK")
</pallas_src>

<mosaic_0001>
module attributes {stable_mosaic.version = 11 : i64} {
  func.func @_head_projection_kernel(%arg0: i32, %arg1: i32, %arg2: memref<16x128xf32, #tpu.memory_space<vmem>>, %arg3: memref<128x256xf32, #tpu.memory_space<vmem>>, %arg4: memref<1x256xf32, #tpu.memory_space<vmem>>, %arg5: memref<16x256xf32, #tpu.memory_space<vmem>>) attributes {dimension_semantics = [#tpu.dimension_semantics<parallel>, #tpu.dimension_semantics<parallel>], iteration_bounds = array<i64: 1, 1>, scalar_prefetch = 0 : i64, scratch_operands = 0 : i64, tpu.core_type = #tpu.core_type<tc>, window_params = [{transform_indices = @transform_0, window_bounds = array<i64: 16, 128>}, {transform_indices = @transform_1, window_bounds = array<i64: 128, 256>}, {transform_indices = @transform_2, window_bounds = array<i64: 1, 256>}, {transform_indices = @transform_3, window_bounds = array<i64: 16, 256>}]} {
    %c0 = arith.constant 0 : index
    %c0_0 = arith.constant 0 : index
    %0 = vector.load %arg2[%c0, %c0_0] : memref<16x128xf32, #tpu.memory_space<vmem>>, vector<16x128xf32>
    %c0_1 = arith.constant 0 : index
    %c0_2 = arith.constant 0 : index
    %1 = vector.load %arg3[%c0_1, %c0_2] : memref<128x256xf32, #tpu.memory_space<vmem>>, vector<128x256xf32>
    %cst = arith.constant dense<0.000000e+00> : vector<16x256xf32>
    %2 = tpu.matmul %0, %1, %cst {dimension_numbers = #tpu.dot_dimension_numbers<[1], [0], [0], [1], [0, 0, 1, 1], [], []>} : vector<16x128xf32>, vector<128x256xf32>, vector<16x256xf32> -> vector<16x256xf32>
    %c0_3 = arith.constant 0 : index
    %c0_4 = arith.constant 0 : index
    %3 = vector.load %arg4[%c0_3, %c0_4] : memref<1x256xf32, #tpu.memory_space<vmem>>, vector<1x256xf32>
    %4 = vector.broadcast %3 : vector<1x256xf32> to vector<16x256xf32>
    %5 = arith.addf %2, %4 : vector<16x256xf32>
    %c0_5 = arith.constant 0 : index
    %c0_6 = arith.constant 0 : index
    %6 = vector.load %arg5[%c0_5, %c0_6] : memref<16x256xf32, #tpu.memory_space<vmem>>, vector<16x256xf32>
    tpu.vector_store %arg5[%c0_5, %c0_6], %5 {strides = array<i32>} : memref<16x256xf32, #tpu.memory_space<vmem>>, vector<16x256xf32>,
    return
  }
  func.func @transform_0(%arg0: i32, %arg1: i32) -> (i32, i32) {
    %c0_i32 = arith.constant 0 : i32
    %c0_i32_0 = arith.constant 0 : i32
    return %arg0, %c0_i32 : i32, i32
  }
  func.func @transform_1(%arg0: i32, %arg1: i32) -> (i32, i32) {
    %c0_i32 = arith.constant 0 : i32
    %c0_i32_0 = arith.constant 0 : i32
    return %c0_i32, %arg1 : i32, i32
  }
  func.func @transform_2(%arg0: i32, %arg1: i32) -> (i32, i32) {
    %c0_i32 = arith.constant 0 : i32
    %c0_i32_0 = arith.constant 0 : i32
    return %c0_i32, %arg1 : i32, i32
  }
  func.func @transform_3(%arg0: i32, %arg1: i32) -> (i32, i32) {
    %c0_i32 = arith.constant 0 : i32
    return %arg0, %arg1 : i32, i32
  }
}

module attributes {stable_mosaic.version = 11 : i64} {
  func.func @_lstm_recurrence_kernel(%arg0: i32, %arg1: i32, %arg2: memref<8x8x512xf32, #tpu.memory_space<vmem>>, %arg3: memref<128x512xf32, #tpu.memory_space<vmem>>, %arg4: memref<8x8x128xf32, #tpu.memory_space<vmem>>, %arg5: memref<8x128xf32, #tpu.memory_space<vmem>>, %arg6: memref<8x128xf32, #tpu.memory_space<vmem>>, %arg7: memref<8x128xf32, #tpu.memory_space<vmem>>) attributes {dimension_semantics = [#tpu.dimension_semantics<parallel>, #tpu.dimension_semantics<arbitrary>], iteration_bounds = array<i64: 1, 1>, scalar_prefetch = 0 : i64, scratch_operands = 2 : i64, tpu.core_type = #tpu.core_type<tc>, window_params = [{transform_indices = @transform_0, window_bounds = array<i64: 8, 8, 512>}, {pipeline_mode = #tpu.pipeline_mode<synchronous>, transform_indices = @transform_1, window_bounds = array<i64: 128, 512>}, {transform_indices = @transform_2, window_bounds = array<i64: 8, 8, 128>}, {transform_indices = @transform_3, window_bounds = array<i64: 8, 128>}]} {
    %c0_i32 = arith.constant 0 : i32
    %0 = arith.cmpi eq, %arg1, %c0_i32 : i32
    %1 = arith.extui %0 : i1 to i32
    %c0_i32_0 = arith.constant 0 : i32
    %2 = arith.cmpi ne, %1, %c0_i32_0 : i32
    scf.if %2 {
      %cst_76 = arith.constant 0.000000e+00 : f32
      %281 = vector.broadcast %cst_76 : f32 to vector<8x128xf32>
      %c0_77 = arith.constant 0 : index
      %c0_78 = arith.constant 0 : index
      %282 = vector.load %arg6[%c0_77, %c0_78] : memref<8x128xf32, #tpu.memory_space<vmem>>, vector<8x128xf32>
      tpu.vector_store %arg6[%c0_77, %c0_78], %281 {strides = array<i32>} : memref<8x128xf32, #tpu.memory_space<vmem>>, vector<8x128xf32>,
      %cst_79 = arith.constant 0.000000e+00 : f32
      %283 = vector.broadcast %cst_79 : f32 to vector<8x128xf32>
      %c0_80 = arith.constant 0 : index
      %c0_81 = arith.constant 0 : index
      %284 = vector.load %arg7[%c0_80, %c0_81] : memref<8x128xf32, #tpu.memory_space<vmem>>, vector<8x128xf32>
      tpu.vector_store %arg7[%c0_80, %c0_81], %283 {strides = array<i32>} : memref<8x128xf32, #tpu.memory_space<vmem>>, vector<8x128xf32>,
    } else {
    }
    %c0 = arith.constant 0 : index
    %c0_1 = arith.constant 0 : index
    %3 = vector.load %arg3[%c0, %c0_1] : memref<128x512xf32, #tpu.memory_space<vmem>>, vector<128x512xf32>
    %c0_2 = arith.constant 0 : index
    %c0_3 = arith.constant 0 : index
    %4 = vector.load %arg6[%c0_2, %c0_3] : memref<8x128xf32, #tpu.memory_space<vmem>>, vector<8x128xf32>
    %c0_4 = arith.constant 0 : index
    %c0_5 = arith.constant 0 : index
    %5 = vector.load %arg7[%c0_4, %c0_5] : memref<8x128xf32, #tpu.memory_space<vmem>>, vector<8x128xf32>
    %c0_i32_6 = arith.constant 0 : i32
    %6 = arith.index_cast %c0_i32_6 : i32 to index
    %c0_7 = arith.constant 0 : index
    %c0_8 = arith.constant 0 : index
    %7 = vector.load %arg2[%6, %c0_7, %c0_8] : memref<8x8x512xf32, #tpu.memory_space<vmem>>, vector<1x8x512xf32>
    %8 = vector.shape_cast %7 : vector<1x8x512xf32> to vector<8x512xf32>
    %cst = arith.constant dense<0.000000e+00> : vector<8x512xf32>
    %9 = tpu.matmul %4, %3, %cst {dimension_numbers = #tpu.dot_dimension_numbers<[1], [0], [0], [1], [0, 0, 1, 1], [], []>} : vector<8x128xf32>, vector<128x512xf32>, vector<8x512xf32> -> vector<8x512xf32>
    %10 = arith.addf %8, %9 : vector<8x512xf32>
    %11 = vector.extract_strided_slice %10 {offsets = [0, 0], sizes = [8, 128], strides = [1, 1]} : vector<8x512xf32> to vector<8x128xf32>
    %12 = arith.negf %11 : vector<8x128xf32>
    %13 = math.exp %12 : vector<8x128xf32>
    %cst_9 = arith.constant 1.000000e+00 : f32
    %14 = vector.broadcast %cst_9 : f32 to vector<8x128xf32>
    %15 = arith.addf %14, %13 : vector<8x128xf32>
    %16 = arith.divf %14, %15 : vector<8x128xf32>
    %17 = vector.extract_strided_slice %10 {offsets = [0, 128], sizes = [8, 128], strides = [1, 1]} : vector<8x512xf32> to vector<8x128xf32>
    %18 = arith.negf %17 : vector<8x128xf32>
    %19 = math.exp %18 : vector<8x128xf32>
    %cst_10 = arith.constant 1.000000e+00 : f32
    %20 = vector.broadcast %cst_10 : f32 to vector<8x128xf32>
    %21 = arith.addf %20, %19 : vector<8x128xf32>
    %22 = arith.divf %20, %21 : vector<8x128xf32>
    %23 = vector.extract_strided_slice %10 {offsets = [0, 256], sizes = [8, 128], strides = [1, 1]} : vector<8x512xf32> to vector<8x128xf32>
    %24 = math.tanh %23 : vector<8x128xf32>
    %25 = vector.extract_strided_slice %10 {offsets = [0, 384], sizes = [8, 128], strides = [1, 1]} : vector<8x512xf32> to vector<8x128xf32>
    %26 = arith.negf %25 : vector<8x128xf32>
    %27 = math.exp %26 : vector<8x128xf32>
    %cst_11 = arith.constant 1.000000e+00 : f32
    %28 = vector.broadcast %cst_11 : f32 to vector<8x128xf32>
    %29 = arith.addf %28, %27 : vector<8x128xf32>
    %30 = arith.divf %28, %29 : vector<8x128xf32>
    %31 = arith.mulf %22, %5 : vector<8x128xf32>
    %32 = arith.mulf %16, %24 : vector<8x128xf32>
    %33 = arith.addf %31, %32 : vector<8x128xf32>
    %34 = math.tanh %33 : vector<8x128xf32>
    %35 = arith.mulf %30, %34 : vector<8x128xf32>
    %36 = arith.index_cast %c0_i32_6 : i32 to index
    %c0_12 = arith.constant 0 : index
    %c0_13 = arith.constant 0 : index
    %37 = vector.load %arg4[%36, %c0_12, %c0_13] : memref<8x8x128xf32, #tpu.memory_space<vmem>>, vector<1x8x128xf32>
    %38 = vector.shape_cast %37 : vector<1x8x128xf32> to vector<8x128xf32>
    %39 = vector.shape_cast %35 : vector<8x128xf32> to vector<1x8x128xf32>
    tpu.vector_store %arg4[%36, %c0_12, %c0_13], %39 {strides = array<i32>} : memref<8x8x128xf32, #tpu.memory_space<vmem>>, vector<1x8x128xf32>,
    %c1_i32 = arith.constant 1 : i32
    %40 = arith.index_cast %c1_i32 : i32 to index
    %c0_14 = arith.constant 0 : index
    %c0_15 = arith.constant 0 : index
    %41 = vector.load %arg2[%40, %c0_14, %c0_15] : memref<8x8x512xf32, #tpu.memory_space<vmem>>, vector<1x8x512xf32>
    %42 = vector.shape_cast %41 : vector<1x8x512xf32> to vector<8x512xf32>
    %cst_16 = arith.constant dense<0.000000e+00> : vector<8x512xf32>
    %43 = tpu.matmul %35, %3, %cst_16 {dimension_numbers = #tpu.dot_dimension_numbers<[1], [0], [0], [1], [0, 0, 1, 1], [], []>} : vector<8x128xf32>, vector<128x512xf32>, vector<8x512xf32> -> vector<8x512xf32>
    %44 = arith.addf %42, %43 : vector<8x512xf32>
    %45 = vector.extract_strided_slice %44 {offsets = [0, 0], sizes = [8, 128], strides = [1, 1]} : vector<8x512xf32> to vector<8x128xf32>
    %46 = arith.negf %45 : vector<8x128xf32>
    %47 = math.exp %46 : vector<8x128xf32>
    %cst_17 = arith.constant 1.000000e+00 : f32
    %48 = vector.broadcast %cst_17 : f32 to vector<8x128xf32>
    %49 = arith.addf %48, %47 : vector<8x128xf32>
    %50 = arith.divf %48, %49 : vector<8x128xf32>
    %51 = vector.extract_strided_slice %44 {offsets = [0, 128], sizes = [8, 128], strides = [1, 1]} : vector<8x512xf32> to vector<8x128xf32>
    %52 = arith.negf %51 : vector<8x128xf32>
    %53 = math.exp %52 : vector<8x128xf32>
    %cst_18 = arith.constant 1.000000e+00 : f32
    %54 = vector.broadcast %cst_18 : f32 to vector<8x128xf32>
    %55 = arith.addf %54, %53 : vector<8x128xf32>
    %56 = arith.divf %54, %55 : vector<8x128xf32>
    %57 = vector.extract_strided_slice %44 {offsets = [0, 256], sizes = [8, 128], strides = [1, 1]} : vector<8x512xf32> to vector<8x128xf32>
    %58 = math.tanh %57 : vector<8x128xf32>
    %59 = vector.extract_strided_slice %44 {offsets = [0, 384], sizes = [8, 128], strides = [1, 1]} : vector<8x512xf32> to vector<8x128xf32>
    %60 = arith.negf %59 : vector<8x128xf32>
    %61 = math.exp %60 : vector<8x128xf32>
    %cst_19 = arith.constant 1.000000e+00 : f32
    %62 = vector.broadcast %cst_19 : f32 to vector<8x128xf32>
    %63 = arith.addf %62, %61 : vector<8x128xf32>
    %64 = arith.divf %62, %63 : vector<8x128xf32>
    %65 = arith.mulf %56, %33 : vector<8x128xf32>
    %66 = arith.mulf %50, %58 : vector<8x128xf32>
    %67 = arith.addf %65, %66 : vector<8x128xf32>
    %68 = math.tanh %67 : vector<8x128xf32>
    %69 = arith.mulf %64, %68 : vector<8x128xf32>
    %70 = arith.index_cast %c1_i32 : i32 to index
    %c0_20 = arith.constant 0 : index
    %c0_21 = arith.constant 0 : index
    %71 = vector.load %arg4[%70, %c0_20, %c0_21] : memref<8x8x128xf32, #tpu.memory_space<vmem>>, vector<1x8x128xf32>
    %72 = vector.shape_cast %71 : vector<1x8x128xf32> to vector<8x128xf32>
    %73 = vector.shape_cast %69 : vector<8x128xf32> to vector<1x8x128xf32>
    tpu.vector_store %arg4[%70, %c0_20, %c0_21], %73 {strides = array<i32>} : memref<8x8x128xf32, #tpu.memory_space<vmem>>, vector<1x8x128xf32>,
    %c2_i32 = arith.constant 2 : i32
    %74 = arith.index_cast %c2_i32 : i32 to index
    %c0_22 = arith.constant 0 : index
    %c0_23 = arith.constant 0 : index
    %75 = vector.load %arg2[%74, %c0_22, %c0_23] : memref<8x8x512xf32, #tpu.memory_space<vmem>>, vector<1x8x512xf32>
    %76 = vector.shape_cast %75 : vector<1x8x512xf32> to vector<8x512xf32>
    %cst_24 = arith.constant dense<0.000000e+00> : vector<8x512xf32>
    %77 = tpu.matmul %69, %3, %cst_24 {dimension_numbers = #tpu.dot_dimension_numbers<[1], [0], [0], [1], [0, 0, 1, 1], [], []>} : vector<8x128xf32>, vector<128x512xf32>, vector<8x512xf32> -> vector<8x512xf32>
    %78 = arith.addf %76, %77 : vector<8x512xf32>
    %79 = vector.extract_strided_slice %78 {offsets = [0, 0], sizes = [8, 128], strides = [1, 1]} : vector<8x512xf32> to vector<8x128xf32>
    %80 = arith.negf %79 : vector<8x128xf32>
    %81 = math.exp %80 : vector<8x128xf32>
    %cst_25 = arith.constant 1.000000e+00 : f32
    %82 = vector.broadcast %cst_25 : f32 to vector<8x128xf32>
    %83 = arith.addf %82, %81 : vector<8x128xf32>
    %84 = arith.divf %82, %83 : vector<8x128xf32>
    %85 = vector.extract_strided_slice %78 {offsets = [0, 128], sizes = [8, 128], strides = [1, 1]} : vector<8x512xf32> to vector<8x128xf32>
    %86 = arith.negf %85 : vector<8x128xf32>
    %87 = math.exp %86 : vector<8x128xf32>
    %cst_26 = arith.constant 1.000000e+00 : f32
    %88 = vector.broadcast %cst_26 : f32 to vector<8x128xf32>
    %89 = arith.addf %88, %87 : vector<8x128xf32>
    %90 = arith.divf %88, %89 : vector<8x128xf32>
    %91 = vector.extract_strided_slice %78 {offsets = [0, 256], sizes = [8, 128], strides = [1, 1]} : vector<8x512xf32> to vector<8x128xf32>
    %92 = math.tanh %91 : vector<8x128xf32>
    %93 = vector.extract_strided_slice %78 {offsets = [0, 384], sizes = [8, 128], strides = [1, 1]} : vector<8x512xf32> to vector<8x128xf32>
    %94 = arith.negf %93 : vector<8x128xf32>
    %95 = math.exp %94 : vector<8x128xf32>
    %cst_27 = arith.constant 1.000000e+00 : f32
    %96 = vector.broadcast %cst_27 : f32 to vector<8x128xf32>
    %97 = arith.addf %96, %95 : vector<8x128xf32>
    %98 = arith.divf %96, %97 : vector<8x128xf32>
    %99 = arith.mulf %90, %67 : vector<8x128xf32>
    %100 = arith.mulf %84, %92 : vector<8x128xf32>
    %101 = arith.addf %99, %100 : vector<8x128xf32>
    %102 = math.tanh %101 : vector<8x128xf32>
    %103 = arith.mulf %98, %102 : vector<8x128xf32>
    %104 = arith.index_cast %c2_i32 : i32 to index
    %c0_28 = arith.constant 0 : index
    %c0_29 = arith.constant 0 : index
    %105 = vector.load %arg4[%104, %c0_28, %c0_29] : memref<8x8x128xf32, #tpu.memory_space<vmem>>, vector<1x8x128xf32>
    %106 = vector.shape_cast %105 : vector<1x8x128xf32> to vector<8x128xf32>
    %107 = vector.shape_cast %103 : vector<8x128xf32> to vector<1x8x128xf32>
    tpu.vector_store %arg4[%104, %c0_28, %c0_29], %107 {strides = array<i32>} : memref<8x8x128xf32, #tpu.memory_space<vmem>>, vector<1x8x128xf32>,
    %c3_i32 = arith.constant 3 : i32
    %108 = arith.index_cast %c3_i32 : i32 to index
    %c0_30 = arith.constant 0 : index
    %c0_31 = arith.constant 0 : index
    %109 = vector.load %arg2[%108, %c0_30, %c0_31] : memref<8x8x512xf32, #tpu.memory_space<vmem>>, vector<1x8x512xf32>
    %110 = vector.shape_cast %109 : vector<1x8x512xf32> to vector<8x512xf32>
    %cst_32 = arith.constant dense<0.000000e+00> : vector<8x512xf32>
    %111 = tpu.matmul %103, %3, %cst_32 {dimension_numbers = #tpu.dot_dimension_numbers<[1], [0], [0], [1], [0, 0, 1, 1], [], []>} : vector<8x128xf32>, vector<128x512xf32>, vector<8x512xf32> -> vector<8x512xf32>
    %112 = arith.addf %110, %111 : vector<8x512xf32>
    %113 = vector.extract_strided_slice %112 {offsets = [0, 0], sizes = [8, 128], strides = [1, 1]} : vector<8x512xf32> to vector<8x128xf32>
    %114 = arith.negf %113 : vector<8x128xf32>
    %115 = math.exp %114 : vector<8x128xf32>
    %cst_33 = arith.constant 1.000000e+00 : f32
    %116 = vector.broadcast %cst_33 : f32 to vector<8x128xf32>
    %117 = arith.addf %116, %115 : vector<8x128xf32>
    %118 = arith.divf %116, %117 : vector<8x128xf32>
    %119 = vector.extract_strided_slice %112 {offsets = [0, 128], sizes = [8, 128], strides = [1, 1]} : vector<8x512xf32> to vector<8x128xf32>
    %120 = arith.negf %119 : vector<8x128xf32>
    %121 = math.exp %120 : vector<8x128xf32>
    %cst_34 = arith.constant 1.000000e+00 : f32
    %122 = vector.broadcast %cst_34 : f32 to vector<8x128xf32>
    %123 = arith.addf %122, %121 : vector<8x128xf32>
    %124 = arith.divf %122, %123 : vector<8x128xf32>
    %125 = vector.extract_strided_slice %112 {offsets = [0, 256], sizes = [8, 128], strides = [1, 1]} : vector<8x512xf32> to vector<8x128xf32>
    %126 = math.tanh %125 : vector<8x128xf32>
    %127 = vector.extract_strided_slice %112 {offsets = [0, 384], sizes = [8, 128], strides = [1, 1]} : vector<8x512xf32> to vector<8x128xf32>
    %128 = arith.negf %127 : vector<8x128xf32>
    %129 = math.exp %128 : vector<8x128xf32>
    %cst_35 = arith.constant 1.000000e+00 : f32
    %130 = vector.broadcast %cst_35 : f32 to vector<8x128xf32>
    %131 = arith.addf %130, %129 : vector<8x128xf32>
    %132 = arith.divf %130, %131 : vector<8x128xf32>
    %133 = arith.mulf %124, %101 : vector<8x128xf32>
    %134 = arith.mulf %118, %126 : vector<8x128xf32>
    %135 = arith.addf %133, %134 : vector<8x128xf32>
    %136 = math.tanh %135 : vector<8x128xf32>
    %137 = arith.mulf %132, %136 : vector<8x128xf32>
    %138 = arith.index_cast %c3_i32 : i32 to index
    %c0_36 = arith.constant 0 : index
    %c0_37 = arith.constant 0 : index
    %139 = vector.load %arg4[%138, %c0_36, %c0_37] : memref<8x8x128xf32, #tpu.memory_space<vmem>>, vector<1x8x128xf32>
    %140 = vector.shape_cast %139 : vector<1x8x128xf32> to vector<8x128xf32>
    %141 = vector.shape_cast %137 : vector<8x128xf32> to vector<1x8x128xf32>
    tpu.vector_store %arg4[%138, %c0_36, %c0_37], %141 {strides = array<i32>} : memref<8x8x128xf32, #tpu.memory_space<vmem>>, vector<1x8x128xf32>,
    %c4_i32 = arith.constant 4 : i32
    %142 = arith.index_cast %c4_i32 : i32 to index
    %c0_38 = arith.constant 0 : index
    %c0_39 = arith.constant 0 : index
    %143 = vector.load %arg2[%142, %c0_38, %c0_39] : memref<8x8x512xf32, #tpu.memory_space<vmem>>, vector<1x8x512xf32>
    %144 = vector.shape_cast %143 : vector<1x8x512xf32> to vector<8x512xf32>
    %cst_40 = arith.constant dense<0.000000e+00> : vector<8x512xf32>
    %145 = tpu.matmul %137, %3, %cst_40 {dimension_numbers = #tpu.dot_dimension_numbers<[1], [0], [0], [1], [0, 0, 1, 1], [], []>} : vector<8x128xf32>, vector<128x512xf32>, vector<8x512xf32> -> vector<8x512xf32>
    %146 = arith.addf %144, %145 : vector<8x512xf32>
    %147 = vector.extract_strided_slice %146 {offsets = [0, 0], sizes = [8, 128], strides = [1, 1]} : vector<8x512xf32> to vector<8x128xf32>
    %148 = arith.negf %147 : vector<8x128xf32>
    %149 = math.exp %148 : vector<8x128xf32>
    %cst_41 = arith.constant 1.000000e+00 : f32
    %150 = vector.broadcast %cst_41 : f32 to vector<8x128xf32>
    %151 = arith.addf %150, %149 : vector<8x128xf32>
    %152 = arith.divf %150, %151 : vector<8x128xf32>
    %153 = vector.extract_strided_slice %146 {offsets = [0, 128], sizes = [8, 128], strides = [1, 1]} : vector<8x512xf32> to vector<8x128xf32>
    %154 = arith.negf %153 : vector<8x128xf32>
    %155 = math.exp %154 : vector<8x128xf32>
    %cst_42 = arith.constant 1.000000e+00 : f32
    %156 = vector.broadcast %cst_42 : f32 to vector<8x128xf32>
    %157 = arith.addf %156, %155 : vector<8x128xf32>
    %158 = arith.divf %156, %157 : vector<8x128xf32>
    %159 = vector.extract_strided_slice %146 {offsets = [0, 256], sizes = [8, 128], strides = [1, 1]} : vector<8x512xf32> to vector<8x128xf32>
    %160 = math.tanh %159 : vector<8x128xf32>
    %161 = vector.extract_strided_slice %146 {offsets = [0, 384], sizes = [8, 128], strides = [1, 1]} : vector<8x512xf32> to vector<8x128xf32>
    %162 = arith.negf %161 : vector<8x128xf32>
    %163 = math.exp %162 : vector<8x128xf32>
    %cst_43 = arith.constant 1.000000e+00 : f32
    %164 = vector.broadcast %cst_43 : f32 to vector<8x128xf32>
    %165 = arith.addf %164, %163 : vector<8x128xf32>
    %166 = arith.divf %164, %165 : vector<8x128xf32>
    %167 = arith.mulf %158, %135 : vector<8x128xf32>
    %168 = arith.mulf %152, %160 : vector<8x128xf32>
    %169 = arith.addf %167, %168 : vector<8x128xf32>
    %170 = math.tanh %169 : vector<8x128xf32>
    %171 = arith.mulf %166, %170 : vector<8x128xf32>
    %172 = arith.index_cast %c4_i32 : i32 to index
    %c0_44 = arith.constant 0 : index
    %c0_45 = arith.constant 0 : index
    %173 = vector.load %arg4[%172, %c0_44, %c0_45] : memref<8x8x128xf32, #tpu.memory_space<vmem>>, vector<1x8x128xf32>
    %174 = vector.shape_cast %173 : vector<1x8x128xf32> to vector<8x128xf32>
    %175 = vector.shape_cast %171 : vector<8x128xf32> to vector<1x8x128xf32>
    tpu.vector_store %arg4[%172, %c0_44, %c0_45], %175 {strides = array<i32>} : memref<8x8x128xf32, #tpu.memory_space<vmem>>, vector<1x8x128xf32>,
    %c5_i32 = arith.constant 5 : i32
    %176 = arith.index_cast %c5_i32 : i32 to index
    %c0_46 = arith.constant 0 : index
    %c0_47 = arith.constant 0 : index
    %177 = vector.load %arg2[%176, %c0_46, %c0_47] : memref<8x8x512xf32, #tpu.memory_space<vmem>>, vector<1x8x512xf32>
    %178 = vector.shape_cast %177 : vector<1x8x512xf32> to vector<8x512xf32>
    %cst_48 = arith.constant dense<0.000000e+00> : vector<8x512xf32>
    %179 = tpu.matmul %171, %3, %cst_48 {dimension_numbers = #tpu.dot_dimension_numbers<[1], [0], [0], [1], [0, 0, 1, 1], [], []>} : vector<8x128xf32>, vector<128x512xf32>, vector<8x512xf32> -> vector<8x512xf32>
    %180 = arith.addf %178, %179 : vector<8x512xf32>
    %181 = vector.extract_strided_slice %180 {offsets = [0, 0], sizes = [8, 128], strides = [1, 1]} : vector<8x512xf32> to vector<8x128xf32>
    %182 = arith.negf %181 : vector<8x128xf32>
    %183 = math.exp %182 : vector<8x128xf32>
    %cst_49 = arith.constant 1.000000e+00 : f32
    %184 = vector.broadcast %cst_49 : f32 to vector<8x128xf32>
    %185 = arith.addf %184, %183 : vector<8x128xf32>
    %186 = arith.divf %184, %185 : vector<8x128xf32>
    %187 = vector.extract_strided_slice %180 {offsets = [0, 128], sizes = [8, 128], strides = [1, 1]} : vector<8x512xf32> to vector<8x128xf32>
    %188 = arith.negf %187 : vector<8x128xf32>
    %189 = math.exp %188 : vector<8x128xf32>
    %cst_50 = arith.constant 1.000000e+00 : f32
    %190 = vector.broadcast %cst_50 : f32 to vector<8x128xf32>
    %191 = arith.addf %190, %189 : vector<8x128xf32>
    %192 = arith.divf %190, %191 : vector<8x128xf32>
    %193 = vector.extract_strided_slice %180 {offsets = [0, 256], sizes = [8, 128], strides = [1, 1]} : vector<8x512xf32> to vector<8x128xf32>
    %194 = math.tanh %193 : vector<8x128xf32>
    %195 = vector.extract_strided_slice %180 {offsets = [0, 384], sizes = [8, 128], strides = [1, 1]} : vector<8x512xf32> to vector<8x128xf32>
    %196 = arith.negf %195 : vector<8x128xf32>
    %197 = math.exp %196 : vector<8x128xf32>
    %cst_51 = arith.constant 1.000000e+00 : f32
    %198 = vector.broadcast %cst_51 : f32 to vector<8x128xf32>
    %199 = arith.addf %198, %197 : vector<8x128xf32>
    %200 = arith.divf %198, %199 : vector<8x128xf32>
    %201 = arith.mulf %192, %169 : vector<8x128xf32>
    %202 = arith.mulf %186, %194 : vector<8x128xf32>
    %203 = arith.addf %201, %202 : vector<8x128xf32>
    %204 = math.tanh %203 : vector<8x128xf32>
    %205 = arith.mulf %200, %204 : vector<8x128xf32>
    %206 = arith.index_cast %c5_i32 : i32 to index
    %c0_52 = arith.constant 0 : index
    %c0_53 = arith.constant 0 : index
    %207 = vector.load %arg4[%206, %c0_52, %c0_53] : memref<8x8x128xf32, #tpu.memory_space<vmem>>, vector<1x8x128xf32>
    %208 = vector.shape_cast %207 : vector<1x8x128xf32> to vector<8x128xf32>
    %209 = vector.shape_cast %205 : vector<8x128xf32> to vector<1x8x128xf32>
    tpu.vector_store %arg4[%206, %c0_52, %c0_53], %209 {strides = array<i32>} : memref<8x8x128xf32, #tpu.memory_space<vmem>>, vector<1x8x128xf32>,
    %c6_i32 = arith.constant 6 : i32
    %210 = arith.index_cast %c6_i32 : i32 to index
    %c0_54 = arith.constant 0 : index
    %c0_55 = arith.constant 0 : index
    %211 = vector.load %arg2[%210, %c0_54, %c0_55] : memref<8x8x512xf32, #tpu.memory_space<vmem>>, vector<1x8x512xf32>
    %212 = vector.shape_cast %211 : vector<1x8x512xf32> to vector<8x512xf32>
    %cst_56 = arith.constant dense<0.000000e+00> : vector<8x512xf32>
    %213 = tpu.matmul %205, %3, %cst_56 {dimension_numbers = #tpu.dot_dimension_numbers<[1], [0], [0], [1], [0, 0, 1, 1], [], []>} : vector<8x128xf32>, vector<128x512xf32>, vector<8x512xf32> -> vector<8x512xf32>
    %214 = arith.addf %212, %213 : vector<8x512xf32>
    %215 = vector.extract_strided_slice %214 {offsets = [0, 0], sizes = [8, 128], strides = [1, 1]} : vector<8x512xf32> to vector<8x128xf32>
    %216 = arith.negf %215 : vector<8x128xf32>
    %217 = math.exp %216 : vector<8x128xf32>
    %cst_57 = arith.constant 1.000000e+00 : f32
    %218 = vector.broadcast %cst_57 : f32 to vector<8x128xf32>
    %219 = arith.addf %218, %217 : vector<8x128xf32>
    %220 = arith.divf %218, %219 : vector<8x128xf32>
    %221 = vector.extract_strided_slice %214 {offsets = [0, 128], sizes = [8, 128], strides = [1, 1]} : vector<8x512xf32> to vector<8x128xf32>
    %222 = arith.negf %221 : vector<8x128xf32>
    %223 = math.exp %222 : vector<8x128xf32>
    %cst_58 = arith.constant 1.000000e+00 : f32
    %224 = vector.broadcast %cst_58 : f32 to vector<8x128xf32>
    %225 = arith.addf %224, %223 : vector<8x128xf32>
    %226 = arith.divf %224, %225 : vector<8x128xf32>
    %227 = vector.extract_strided_slice %214 {offsets = [0, 256], sizes = [8, 128], strides = [1, 1]} : vector<8x512xf32> to vector<8x128xf32>
    %228 = math.tanh %227 : vector<8x128xf32>
    %229 = vector.extract_strided_slice %214 {offsets = [0, 384], sizes = [8, 128], strides = [1, 1]} : vector<8x512xf32> to vector<8x128xf32>
    %230 = arith.negf %229 : vector<8x128xf32>
    %231 = math.exp %230 : vector<8x128xf32>
    %cst_59 = arith.constant 1.000000e+00 : f32
    %232 = vector.broadcast %cst_59 : f32 to vector<8x128xf32>
    %233 = arith.addf %232, %231 : vector<8x128xf32>
    %234 = arith.divf %232, %233 : vector<8x128xf32>
    %235 = arith.mulf %226, %203 : vector<8x128xf32>
    %236 = arith.mulf %220, %228 : vector<8x128xf32>
    %237 = arith.addf %235, %236 : vector<8x128xf32>
    %238 = math.tanh %237 : vector<8x128xf32>
    %239 = arith.mulf %234, %238 : vector<8x128xf32>
    %240 = arith.index_cast %c6_i32 : i32 to index
    %c0_60 = arith.constant 0 : index
    %c0_61 = arith.constant 0 : index
    %241 = vector.load %arg4[%240, %c0_60, %c0_61] : memref<8x8x128xf32, #tpu.memory_space<vmem>>, vector<1x8x128xf32>
    %242 = vector.shape_cast %241 : vector<1x8x128xf32> to vector<8x128xf32>
    %243 = vector.shape_cast %239 : vector<8x128xf32> to vector<1x8x128xf32>
    tpu.vector_store %arg4[%240, %c0_60, %c0_61], %243 {strides = array<i32>} : memref<8x8x128xf32, #tpu.memory_space<vmem>>, vector<1x8x128xf32>,
    %c7_i32 = arith.constant 7 : i32
    %244 = arith.index_cast %c7_i32 : i32 to index
    %c0_62 = arith.constant 0 : index
    %c0_63 = arith.constant 0 : index
    %245 = vector.load %arg2[%244, %c0_62, %c0_63] : memref<8x8x512xf32, #tpu.memory_space<vmem>>, vector<1x8x512xf32>
    %246 = vector.shape_cast %245 : vector<1x8x512xf32> to vector<8x512xf32>
    %cst_64 = arith.constant dense<0.000000e+00> : vector<8x512xf32>
    %247 = tpu.matmul %239, %3, %cst_64 {dimension_numbers = #tpu.dot_dimension_numbers<[1], [0], [0], [1], [0, 0, 1, 1], [], []>} : vector<8x128xf32>, vector<128x512xf32>, vector<8x512xf32> -> vector<8x512xf32>
    %248 = arith.addf %246, %247 : vector<8x512xf32>
    %249 = vector.extract_strided_slice %248 {offsets = [0, 0], sizes = [8, 128], strides = [1, 1]} : vector<8x512xf32> to vector<8x128xf32>
    %250 = arith.negf %249 : vector<8x128xf32>
    %251 = math.exp %250 : vector<8x128xf32>
    %cst_65 = arith.constant 1.000000e+00 : f32
    %252 = vector.broadcast %cst_65 : f32 to vector<8x128xf32>
    %253 = arith.addf %252, %251 : vector<8x128xf32>
    %254 = arith.divf %252, %253 : vector<8x128xf32>
    %255 = vector.extract_strided_slice %248 {offsets = [0, 128], sizes = [8, 128], strides = [1, 1]} : vector<8x512xf32> to vector<8x128xf32>
    %256 = arith.negf %255 : vector<8x128xf32>
    %257 = math.exp %256 : vector<8x128xf32>
    %cst_66 = arith.constant 1.000000e+00 : f32
    %258 = vector.broadcast %cst_66 : f32 to vector<8x128xf32>
    %259 = arith.addf %258, %257 : vector<8x128xf32>
    %260 = arith.divf %258, %259 : vector<8x128xf32>
    %261 = vector.extract_strided_slice %248 {offsets = [0, 256], sizes = [8, 128], strides = [1, 1]} : vector<8x512xf32> to vector<8x128xf32>
    %262 = math.tanh %261 : vector<8x128xf32>
    %263 = vector.extract_strided_slice %248 {offsets = [0, 384], sizes = [8, 128], strides = [1, 1]} : vector<8x512xf32> to vector<8x128xf32>
    %264 = arith.negf %263 : vector<8x128xf32>
    %265 = math.exp %264 : vector<8x128xf32>
    %cst_67 = arith.constant 1.000000e+00 : f32
    %266 = vector.broadcast %cst_67 : f32 to vector<8x128xf32>
    %267 = arith.addf %266, %265 : vector<8x128xf32>
    %268 = arith.divf %266, %267 : vector<8x128xf32>
    %269 = arith.mulf %260, %237 : vector<8x128xf32>
    %270 = arith.mulf %254, %262 : vector<8x128xf32>
    %271 = arith.addf %269, %270 : vector<8x128xf32>
    %272 = math.tanh %271 : vector<8x128xf32>
    %273 = arith.mulf %268, %272 : vector<8x128xf32>
    %274 = arith.index_cast %c7_i32 : i32 to index
    %c0_68 = arith.constant 0 : index
    %c0_69 = arith.constant 0 : index
    %275 = vector.load %arg4[%274, %c0_68, %c0_69] : memref<8x8x128xf32, #tpu.memory_space<vmem>>, vector<1x8x128xf32>
    %276 = vector.shape_cast %275 : vector<1x8x128xf32> to vector<8x128xf32>
    %277 = vector.shape_cast %273 : vector<8x128xf32> to vector<1x8x128xf32>
    tpu.vector_store %arg4[%274, %c0_68, %c0_69], %277 {strides = array<i32>} : memref<8x8x128xf32, #tpu.memory_space<vmem>>, vector<1x8x128xf32>,
    %c8_i32 = arith.constant 8 : i32
    %c0_70 = arith.constant 0 : index
    %c0_71 = arith.constant 0 : index
    %278 = vector.load %arg6[%c0_70, %c0_71] : memref<8x128xf32, #tpu.memory_space<vmem>>, vector<8x128xf32>
    tpu.vector_store %arg6[%c0_70, %c0_71], %273 {strides = array<i32>} : memref<8x128xf32, #tpu.memory_space<vmem>>, vector<8x128xf32>,
    %c0_72 = arith.constant 0 : index
    %c0_73 = arith.constant 0 : index
    %279 = vector.load %arg7[%c0_72, %c0_73] : memref<8x128xf32, #tpu.memory_space<vmem>>, vector<8x128xf32>
    tpu.vector_store %arg7[%c0_72, %c0_73], %271 {strides = array<i32>} : memref<8x128xf32, #tpu.memory_space<vmem>>, vector<8x128xf32>,
    %c0_74 = arith.constant 0 : index
    %c0_75 = arith.constant 0 : index
    %280 = vector.load %arg5[%c0_74, %c0_75] : memref<8x128xf32, #tpu.memory_space<vmem>>, vector<8x128xf32>
    tpu.vector_store %arg5[%c0_74, %c0_75], %271 {strides = array<i32>} : memref<8x128xf32, #tpu.memory_space<vmem>>, vector<8x128xf32>,
    return
  }
  func.func @transform_0(%arg0: i32, %arg1: i32) -> (i32, i32, i32) {
    %c0_i32 = arith.constant 0 : i32
    %c0_i32_0 = arith.constant 0 : i32
    return %arg1, %arg0, %c0_i32 : i32, i32, i32
  }
  func.func @transform_1(%arg0: i32, %arg1: i32) -> (i32, i32) {
    %c0_i32 = arith.constant 0 : i32
    %c0_i32_0 = arith.constant 0 : i32
    %c0_i32_1 = arith.constant 0 : i32
    return %c0_i32, %c0_i32_0 : i32, i32
  }
  func.func @transform_2(%arg0: i32, %arg1: i32) -> (i32, i32, i32) {
    %c0_i32 = arith.constant 0 : i32
    %c0_i32_0 = arith.constant 0 : i32
    return %arg1, %arg0, %c0_i32 : i32, i32, i32
  }
  func.func @transform_3(%arg0: i32, %arg1: i32) -> (i32, i32) {
    %c0_i32 = arith.constant 0 : i32
    %c0_i32_0 = arith.constant 0 : i32
    return %arg0, %c0_i32 : i32, i32
  }
}

</mosaic_0001>

<bundles_post_ra>
// kernel: generate_model_lstm_forward.3
= control target key start
LH: loop header
LB: loop body
LE: loop exit
PB: predicated region body
PF: predicated region fallthrough
CT: control target
= control target key end

     0   :  { %v234_v7 = vmov 0.0   ;;  %s375_s0 = inlined_call_operand.vmem [shape: f32[16,128], index: 0, kind: input, shape index: {}]   ;;  %s376_s1 = inlined_call_operand.vmem [shape: f32[128,256], index: 1, kind: input, shape index: {}]   ;;  %s377_s2 = inlined_call_operand.vmem [shape: f32[1,256], index: 2, kind: input, shape index: {}]   ;;  %s378_s3 = inlined_call_operand.hbm [shape: f32[16,256], index: 3, kind: output, shape index: {}]  }
   0x1   :  { %v18_v0 = vld [vmem:[%s376_s1 + $0x8] sm:$0xff]  ;;  %v20_v1 = vld [vmem:[%s376_s1 + $0x18] sm:$0xff]  ;;  %v17_v2 = vld [vmem:[%s376_s1] sm:$0xff]  ;;  %125 = vmatprep.mubr.f32.mxu0 %v234_v7  ;;  %131 = vmatprep.mubr.f32.mxu1 %v234_v7 }
   0x2   :  { %v158_v3 = vpack.c.bf16 %v20_v1, %v18_v0  ;;  %v19_v4 = vld [vmem:[%s376_s1 + $0x10] sm:$0xff]  ;;  %v22_v5 = vld [vmem:[%s376_s1 + $0x28] sm:$0xff]  ;;  %v24_v6 = vld [vmem:[%s376_s1 + $0x38] sm:$0xff] }
   0x3   :  { %v160_v8 = vpack.c.bf16 %v19_v4, %v17_v2  ;;  %v162_v9 = vpack.c.bf16 %v24_v6, %v22_v5  ;;  %v21_v10 = vld [vmem:[%s376_s1 + $0x20] sm:$0xff]  ;;  %v23_v11 = vld [vmem:[%s376_s1 + $0x30] sm:$0xff]  ;;  %v26_v12 = vld [vmem:[%s376_s1 + $0x48] sm:$0xff] }
   0x4   :  { %159 = vmatprep.subr.bf16.mxu0 %v158_v3  ;;  %190 = vmatprep.subr.bf16.mxu1 %v158_v3  ;;  %v28_v13 = vld [vmem:[%s376_s1 + $0x58] sm:$0xff]  ;;  %v164_v14 = vpack.c.bf16 %v23_v11, %v21_v10  ;;  %v25_v16 = vld [vmem:[%s376_s1 + $0x40] sm:$0xff]  ;;  %v27_v17 = vld [vmem:[%s376_s1 + $0x50] sm:$0xff] }
   0x5   :  { %161 = vmatpush1.bf16.msra.mxu0 %v160_v8  ;;  %198 = vmatpush1.bf16.msra.mxu1 %v160_v8  ;;  %v166_v15 = vpack.c.bf16 %v28_v13, %v26_v12  ;;  %v30_v18 = vld [vmem:[%s376_s1 + $0x68] sm:$0xff]  ;;  %v32_v19 = vld [vmem:[%s376_s1 + $0x78] sm:$0xff]  ;;  %v168_v20 = vpack.c.bf16 %v27_v17, %v25_v16  ;;  %v29_v22 = vld [vmem:[%s376_s1 + $0x60] sm:$0xff] }
   0x6   :  { %163 = vmatprep.subr.bf16.mxu0 %v162_v9  ;;  %191 = vmatprep.subr.bf16.mxu1 %v162_v9  ;;  %v170_v21 = vpack.c.bf16 %v32_v19, %v30_v18  ;;  %v31_v23 = vld [vmem:[%s376_s1 + $0x70] sm:$0xff]  ;;  %v34_v24 = vld [vmem:[%s376_s1 + $0x88] sm:$0xff]  ;;  %v36_v25 = vld [vmem:[%s376_s1 + $0x98] sm:$0xff] }
   0x9   :  { %165 = vmatpush1.bf16.msra.mxu0 %v164_v14  ;;  %199 = vmatpush1.bf16.msra.mxu1 %v164_v14 }
   0xa   :  { %167 = vmatprep.subr.bf16.mxu0 %v166_v15  ;;  %192 = vmatprep.subr.bf16.mxu1 %v166_v15 }
   0xb   :  { %8 = vsyncpa [#allocation3], 0  ;;  %v172_v26 = vpack.c.bf16 %v31_v23, %v29_v22  ;;  %v174_v27 = vpack.c.bf16 %v36_v25, %v34_v24  ;;  %v33_v28 = vld [vmem:[%s376_s1 + $0x80] sm:$0xff]  ;;  %v35_v29 = vld [vmem:[%s376_s1 + $0x90] sm:$0xff]  ;;  %v51_v51 = vlaneseq  ;;  %s235_s27 = smov [#allocation2]  }
   0xc   :  { %v38_v30 = vld [vmem:[%s376_s1 + $0xa8] sm:$0xff]  ;;  %v40_v31 = vld [vmem:[%s376_s1 + $0xb8] sm:$0xff]  ;;  %v176_v32 = vpack.c.bf16 %v35_v29, %v33_v28  ;;  %v37_v34 = vld [vmem:[%s376_s1 + $0xa0] sm:$0xff]  ;;  %s147_s28 = sshll.u32 %s235_s27, 4  ;;  %s148_s28 = int_to_ptr.vmem [resolvable:$true] %s147_s28 }
   0xd   :  { %169 = vmatpush1.bf16.msra.mxu0 %v168_v20  ;;  %200 = vmatpush1.bf16.msra.mxu1 %v168_v20  ;;  %v178_v33 = vpack.c.bf16 %v40_v31, %v38_v30  ;;  %v39_v35 = vld [vmem:[%s376_s1 + $0xb0] sm:$0xff]  ;;  %v42_v36 = vld [vmem:[%s376_s1 + $0xc8] sm:$0xff]  ;;  %v44_v37 = vld [vmem:[%s376_s1 + $0xd8] sm:$0xff]  ;;  %v52_v52 = vshrl.u32 %v51_v51, 7  ;;  %p215_p1 = scmp.lt.s32.totalorder %s148_s28, %s148_s28 }
   0xe   :  { %171 = vmatprep.subr.bf16.mxu0 %v170_v21  ;;  %193 = vmatprep.subr.bf16.mxu1 %v170_v21  ;;  %v180_v38 = vpack.c.bf16 %v39_v35, %v37_v34  ;;  %v182_v39 = vpack.c.bf16 %v44_v37, %v42_v36  ;;  %v41_v40 = vld [vmem:[%s376_s1 + $0xc0] sm:$0xff]  ;;  %v43_v41 = vld [vmem:[%s376_s1 + $0xd0] sm:$0xff]  ;;  %v46_v42 = vld [vmem:[%s376_s1 + $0xe8] sm:$0xff] }
   0xf   :  { %v48_v43 = vld [vmem:[%s376_s1 + $0xf8] sm:$0xff]  ;;  %v184_v44 = vpack.c.bf16 %v43_v41, %v41_v40  ;;  %v45_v46 = vld [vmem:[%s376_s1 + $0xe0] sm:$0xff]  ;;  %v47_v47 = vld [vmem:[%s376_s1 + $0xf0] sm:$0xff]  ;;  %v53_v53 = vsub.s32 0, %v52_v52  ;;  %v57_v55 = vsub.s32 1, %v52_v52 }
  0x10   :  { %v186_v45 = vpack.c.bf16 %v48_v43, %v46_v42  ;;  %v188_v48 = vpack.c.bf16 %v47_v47, %v45_v46  ;;  %v15_v49 = vld [vmem:[%s375_s0] sm:$0xff]  ;;  %v16_v50 = vld [vmem:[%s375_s0 + $0x8] sm:$0xff]  ;;  %s210_s0 = scalar_lea.vmem %s148_s28, 512 }
  0x11   :  { %173 = vmatpush1.bf16.msra.mxu0 %v172_v26  ;;  %201 = vmatpush1.bf16.msra.mxu1 %v172_v26  ;;  %v49_v54 = vld [vmem:[%s377_s2] sm:$0x3]  ;;  %p211_p0 = scmp.ne.s32.totalorder %s148_s28, %s210_s0  ;;  %p216_p2 = scmp.lt.s32.totalorder %s210_s0, %s210_s0 }
  0x12   :  { %175 = vmatprep.subr.bf16.mxu0 %v174_v27  ;;  %194 = vmatprep.subr.bf16.mxu1 %v174_v27  ;;  %v54_v56 = vrot.slane %v49_v54, %v53_v53  ;;  %v58_v57 = vrot.slane %v49_v54, %v57_v55 }
  0x13   :  { %p217_p3 = por %p216_p2, %p215_p1 }
  0x15   :  { %177 = vmatpush1.bf16.msra.mxu0 %v176_v32  ;;  %202 = vmatpush1.bf16.msra.mxu1 %v176_v32  ;;  %p218_p4 = pnand %p217_p3, %p211_p0 }
  0x16   :  { %179 = vmatprep.subr.bf16.mxu0 %v178_v33  ;;  %195 = vmatprep.subr.bf16.mxu1 %v178_v33 }
  0x19   :  { %181 = vmatpush1.bf16.msra.mxu0 %v180_v38  ;;  %203 = vmatpush1.bf16.msra.mxu1 %v180_v38 }
  0x1a   :  { %183 = vmatprep.subr.bf16.mxu0 %v182_v39  ;;  %196 = vmatprep.subr.bf16.mxu1 %v182_v39 }
  0x1d   :  { %185 = vmatpush1.bf16.msra.mxu0 %v184_v44  ;;  %204 = vmatpush1.bf16.msra.mxu1 %v184_v44 }
  0x1e   :  { %187 = vmatprep.subr.bf16.mxu0 %v186_v45  ;;  %197 = vmatprep.subr.bf16.mxu1 %v186_v45 }
  0x21   :  { %189 = vmatpush1.bf16.msra.mxu0 %v188_v48  ;;  %205 = vmatpush1.bf16.msra.mxu1 %v188_v48 }
  0x24   :  { %126 = vmatmul.mubr.f32.vlgmr.msra.gmra.mrb[0].mxu0 %v15_v49  ;;  %132 = vmatmul.mubr.f32.vlgmr.msra.gmra.mrb[0].mxu1 %v16_v50 }
  0xf7   :  { %v127_v58 = vpop.f32.mrb[0].mxu0  ;;  %v133_v59 = vpop.f32.mrb[0].mxu1 }
  0xf8   :  { %v128_v60 = vadd.f32 %v127_v58, %v54_v56  ;;  %v134_v61 = vadd.f32 %v133_v59, %v54_v56  ;;  %v129_v62 = vpop.f32.mrb[1].mxu0  ;;  %v135_v63 = vpop.f32.mrb[1].mxu1 }
  0xf9   :  { %v130_v0 = vadd.f32 %v129_v62, %v58_v57  ;;  %v136_v1 = vadd.f32 %v135_v63, %v58_v57 }
  0xfa   :  { %138 = vst [vmem:[#allocation2] sm:$0xff] %v128_v60  ;;  %140 = vst [vmem:[#allocation2 + $0x10] sm:$0xff] %v134_v61 }
  0xfb   :  { %139 = vst [vmem:[#allocation2 + $0x8] sm:$0xff] %v130_v0  ;;  %141 = vst [vmem:[#allocation2 + $0x18] sm:$0xff] %v136_v1 }
  0xfc   :  { %221 = shalt.err (!%p218_p4)
}
  0xfd   :  { %s222_s30 = scalar_lea.hbm %s378_s3, 512 }
  0xfe   :  { %p223_p5 = scmp.ne.s32.totalorder %s378_s3, %s222_s30  ;;  %p226_p6 = scmp.lt.u32.totalorder %s222_s30, %s378_s3 }
 0x100   :  { %p228_p7 = pnand %p226_p6, %p223_p5 }
 0x102   :  { %231 = shalt.err (!%p228_p7)
}
 0x103   :  { %s236_s8 = smov 256   ;;  %s237_s9 = smov 16  }
 0x104   :  { %153 = dma.vmem_to_hbm [thread:$0]  %s148_s28, 512, %s378_s3, [#allocation3], %s236_s8, %s236_s8, %s237_s9  }
 0x105   :  { %232 = dma.done.wait [#allocation3], 512  }
 0x106   :  { %233 = vsyncadd [#allocation3], 4294966784 }
 0x107   :  { %157 = vsyncpa [#allocation3], 1 }

// kernel: generate_model_lstm_forward.2
= control target key start
LH: loop header
LB: loop body
LE: loop exit
PB: predicated region body
PF: predicated region fallthrough
CT: control target
= control target key end

     0   :  { %v2210_v3 = vmov 0.0   ;;  %s2908_s1 = inlined_call_operand.vmem [shape: f32[128,512], index: 1, kind: input, shape index: {}]   ;;  %s2909_s0 = inlined_call_operand.vmem [shape: f32[8,8,512], index: 0, kind: input, shape index: {}]   ;;  %s2910_s2 = inlined_call_operand.vmem [shape: f32[8,8,128], index: 2, kind: output, shape index: {0}]   ;;  %s2911_s3 = inlined_call_operand.vmem [shape: f32[8,128], index: 3, kind: output, shape index: {1}]  }
   0x1   :  { %v20_v0 = vld [vmem:[%s2908_s1 + $0x8] sm:$0xff]  ;;  %v19_v2 = vld [vmem:[%s2908_s1] sm:$0xff]  ;;  %153 = vmatprep.mubr.f32.mxu0 %v2210_v3  ;;  %224 = vmatprep.mubr.f32.mxu1 %v2210_v3  ;;  %v22_v19 = vld [vmem:[%s2908_s1 + $0x18] sm:$0xff] }
   0x2   :  { %v24_v1 = vld [vmem:[%s2908_s1 + $0x28] sm:$0xff]  ;;  %v23_v5 = vld [vmem:[%s2908_s1 + $0x20] sm:$0xff]  ;;  %v26_v20 = vld [vmem:[%s2908_s1 + $0x38] sm:$0xff] }
   0x3   :  { %v2242_v4 = vpack.c.bf16 %v24_v1, %v20_v0  ;;  %v28_v6 = vld [vmem:[%s2908_s1 + $0x48] sm:$0xff]  ;;  %v2253_v8 = vpack.c.bf16 %v23_v5, %v19_v2  ;;  %v27_v10 = vld [vmem:[%s2908_s1 + $0x40] sm:$0xff]  ;;  %v2294_v22 = vpack.c.bf16 %v26_v20, %v22_v19  ;;  %v21_v23 = vld [vmem:[%s2908_s1 + $0x10] sm:$0xff] }
   0x4   :  { %v32_v7 = vld [vmem:[%s2908_s1 + $0x68] sm:$0xff]  ;;  %v31_v11 = vld [vmem:[%s2908_s1 + $0x60] sm:$0xff]  ;;  %v25_v24 = vld [vmem:[%s2908_s1 + $0x30] sm:$0xff] }
   0x5   :  { %v2255_v9 = vpack.c.bf16 %v32_v7, %v28_v6  ;;  %v36_v12 = vld [vmem:[%s2908_s1 + $0x88] sm:$0xff]  ;;  %1570 = vmatprep.subr.bf16.mxu0 %v2242_v4  ;;  %v2271_v14 = vpack.c.bf16 %v31_v11, %v27_v10  ;;  %v35_v15 = vld [vmem:[%s2908_s1 + $0x80] sm:$0xff]  ;;  %v2302_v25 = vpack.c.bf16 %v25_v24, %v21_v23  ;;  %1602 = vmatprep.subr.bf16.mxu1 %v2294_v22  ;;  %v30_v27 = vld [vmem:[%s2908_s1 + $0x58] sm:$0xff] }
   0x6   :  { %v40_v13 = vld [vmem:[%s2908_s1 + $0xa8] sm:$0xff]  ;;  %1572 = vmatpush1.bf16.msra.mxu0 %v2253_v8  ;;  %v39_v16 = vld [vmem:[%s2908_s1 + $0xa0] sm:$0xff]  ;;  %v34_v28 = vld [vmem:[%s2908_s1 + $0x78] sm:$0xff] }
   0x7   :  { %1574 = vmatprep.subr.bf16.mxu0 %v2255_v9  ;;  %v2280_v17 = vpack.c.bf16 %v40_v13, %v36_v12  ;;  %v44_v18 = vld [vmem:[%s2908_s1 + $0xc8] sm:$0xff]  ;;  %v2305_v26 = vpack.c.bf16 %v39_v16, %v35_v15  ;;  %v29_v29 = vld [vmem:[%s2908_s1 + $0x50] sm:$0xff]  ;;  %v43_v31 = vld [vmem:[%s2908_s1 + $0xc0] sm:$0xff]  ;;  %1604 = vmatpush1.bf16.msra.mxu1 %v2302_v25  ;;  %v2327_v33 = vpack.c.bf16 %v34_v28, %v30_v27 }
   0x8   :  { %v48_v21 = vld [vmem:[%s2908_s1 + $0xe8] sm:$0xff]  ;;  %v47_v32 = vld [vmem:[%s2908_s1 + $0xe0] sm:$0xff]  ;;  %v33_v34 = vld [vmem:[%s2908_s1 + $0x70] sm:$0xff] }
   0x9   :  { %v2318_v30 = vpack.c.bf16 %v48_v21, %v44_v18  ;;  %v52_v35 = vld [vmem:[%s2908_s1 + $0x108] sm:$0xff]  ;;  %v2338_v37 = vpack.c.bf16 %v33_v34, %v29_v29  ;;  %v38_v38 = vld [vmem:[%s2908_s1 + $0x98] sm:$0xff]  ;;  %1606 = vmatprep.subr.bf16.mxu1 %v2327_v33  ;;  %v37_v40 = vld [vmem:[%s2908_s1 + $0x90] sm:$0xff]  ;;  %v2354_v42 = vpack.c.bf16 %v47_v32, %v43_v31 }
   0xa   :  { %1576 = vmatpush1.bf16.msra.mxu0 %v2271_v14  ;;  %v56_v36 = vld [vmem:[%s2908_s1 + $0x128] sm:$0xff]  ;;  %v42_v39 = vld [vmem:[%s2908_s1 + $0xb8] sm:$0xff]  ;;  %v41_v41 = vld [vmem:[%s2908_s1 + $0xb0] sm:$0xff] }
   0xb   :  { %1578 = vmatprep.subr.bf16.mxu0 %v2280_v17  ;;  %v51_v43 = vld [vmem:[%s2908_s1 + $0x100] sm:$0xff]  ;;  %v2362_v45 = vpack.c.bf16 %v42_v39, %v38_v38  ;;  %v2365_v46 = vpack.c.bf16 %v56_v36, %v52_v35  ;;  %1608 = vmatpush1.bf16.msra.mxu1 %v2338_v37  ;;  %v60_v47 = vld [vmem:[%s2908_s1 + $0x148] sm:$0xff]  ;;  %v2371_v48 = vpack.c.bf16 %v41_v41, %v37_v40  ;;  %v46_v49 = vld [vmem:[%s2908_s1 + $0xd8] sm:$0xff] }
   0xc   :  { %v55_v44 = vld [vmem:[%s2908_s1 + $0x120] sm:$0xff]  ;;  %v50_v50 = vld [vmem:[%s2908_s1 + $0xf8] sm:$0xff]  ;;  %v64_v51 = vld [vmem:[%s2908_s1 + $0x168] sm:$0xff] }
   0xd   :  { %1610 = vmatprep.subr.bf16.mxu1 %v2362_v45  ;;  %v2383_v52 = vpack.c.bf16 %v50_v50, %v46_v49  ;;  %v45_v53 = vld [vmem:[%s2908_s1 + $0xd0] sm:$0xff]  ;;  %v2392_v55 = vpack.c.bf16 %v55_v44, %v51_v43  ;;  %v54_v56 = vld [vmem:[%s2908_s1 + $0x118] sm:$0xff]  ;;  %v2401_v58 = vpack.c.bf16 %v64_v51, %v60_v47  ;;  %v59_v59 = vld [vmem:[%s2908_s1 + $0x140] sm:$0xff] }
   0xe   :  { %1580 = vmatpush1.bf16.msra.mxu0 %v2305_v26  ;;  %v49_v54 = vld [vmem:[%s2908_s1 + $0xf0] sm:$0xff]  ;;  %v58_v57 = vld [vmem:[%s2908_s1 + $0x138] sm:$0xff]  ;;  %v63_v60 = vld [vmem:[%s2908_s1 + $0x160] sm:$0xff] }
   0xf   :  { %1582 = vmatprep.subr.bf16.mxu0 %v2318_v30  ;;  %1612 = vmatpush1.bf16.msra.mxu1 %v2371_v48  ;;  %v68_v61 = vld [vmem:[%s2908_s1 + $0x188] sm:$0xff]  ;;  %v2413_v62 = vpack.c.bf16 %v49_v54, %v45_v53  ;;  %v2419_v0 = vpack.c.bf16 %v58_v57, %v54_v56  ;;  %v53_v1 = vld [vmem:[%s2908_s1 + $0x110] sm:$0xff]  ;;  %v62_v5 = vld [vmem:[%s2908_s1 + $0x158] sm:$0xff]  ;;  %v2434_v7 = vpack.c.bf16 %v63_v60, %v59_v59 }
  0x10   :  { %v72_v63 = vld [vmem:[%s2908_s1 + $0x1a8] sm:$0xff]  ;;  %1614 = vmatprep.subr.bf16.mxu1 %v2383_v52  ;;  %v57_v2 = vld [vmem:[%s2908_s1 + $0x130] sm:$0xff]  ;;  %v66_v6 = vld [vmem:[%s2908_s1 + $0x178] sm:$0xff] }
  0x11   :  { %v2437_v10 = vpack.c.bf16 %v72_v63, %v68_v61  ;;  %v67_v11 = vld [vmem:[%s2908_s1 + $0x180] sm:$0xff]  ;;  %v76_v13 = vld [vmem:[%s2908_s1 + $0x1c8] sm:$0xff]  ;;  %v2449_v15 = vpack.c.bf16 %v57_v2, %v53_v1  ;;  %v2455_v18 = vpack.c.bf16 %v66_v6, %v62_v5  ;;  %v61_v19 = vld [vmem:[%s2908_s1 + $0x150] sm:$0xff] }
  0x12   :  { %1584 = vmatpush1.bf16.msra.mxu0 %v2354_v42  ;;  %v71_v12 = vld [vmem:[%s2908_s1 + $0x1a0] sm:$0xff]  ;;  %v80_v16 = vld [vmem:[%s2908_s1 + $0x1e8] sm:$0xff]  ;;  %v65_v20 = vld [vmem:[%s2908_s1 + $0x170] sm:$0xff] }
  0x13   :  { %1586 = vmatprep.subr.bf16.mxu0 %v2365_v46  ;;  %1616 = vmatpush1.bf16.msra.mxu1 %v2413_v62  ;;  %v70_v21 = vld [vmem:[%s2908_s1 + $0x198] sm:$0xff]  ;;  %v2470_v24 = vpack.c.bf16 %v71_v12, %v67_v11  ;;  %v2473_v27 = vpack.c.bf16 %v80_v16, %v76_v13  ;;  %v75_v28 = vld [vmem:[%s2908_s1 + $0x1c0] sm:$0xff]  ;;  %v2482_v31 = vpack.c.bf16 %v65_v20, %v61_v19  ;;  %v69_v34 = vld [vmem:[%s2908_s1 + $0x190] sm:$0xff] }
  0x14   :  { %1618 = vmatprep.subr.bf16.mxu1 %v2419_v0  ;;  %v74_v23 = vld [vmem:[%s2908_s1 + $0x1b8] sm:$0xff]  ;;  %v79_v29 = vld [vmem:[%s2908_s1 + $0x1e0] sm:$0xff]  ;;  %v73_v35 = vld [vmem:[%s2908_s1 + $0x1b0] sm:$0xff] }
  0x15   :  { %v2485_v32 = vpack.c.bf16 %v74_v23, %v70_v21  ;;  %v78_v36 = vld [vmem:[%s2908_s1 + $0x1d8] sm:$0xff]  ;;  %v2500_v39 = vpack.c.bf16 %v79_v29, %v75_v28  ;;  %v2504_v40 = vpack.c.bf16 %v73_v35, %v69_v34  ;;  %v77_v43 = vld [vmem:[%s2908_s1 + $0x1d0] sm:$0xff]  ;;  %v85_v49 = vld [vmem:[%s2909_s0] sm:$0xff] }
  0x16   :  { %1588 = vmatpush1.bf16.msra.mxu0 %v2392_v55  ;;  %v82_v38 = vld [vmem:[%s2908_s1 + $0x1f8] sm:$0xff]  ;;  %v81_v44 = vld [vmem:[%s2908_s1 + $0x1f0] sm:$0xff]  ;;  %v86_v50 = vld [vmem:[%s2909_s0 + $0x8] sm:$0xff] }
  0x17   :  { %1590 = vmatprep.subr.bf16.mxu0 %v2401_v58  ;;  %1620 = vmatpush1.bf16.msra.mxu1 %v2449_v15  ;;  %v2507_v41 = vpack.c.bf16 %v82_v38, %v78_v36  ;;  %v2517_v47 = vpack.c.bf16 %v81_v44, %v77_v43  ;;  %v88_v60 = vld [vmem:[%s2909_s0 + $0x18] sm:$0xff]  ;;  %v87_v2 = vld [vmem:[%s2909_s0 + $0x10] sm:$0xff]  ;;  %v1513_v44 = vld [vmem:[%s2909_s0 + $0x20] sm:$0xff] }
  0x18   :  { %1622 = vmatprep.subr.bf16.mxu1 %v2455_v18 }
  0x1a   :  { %1592 = vmatpush1.bf16.msra.mxu0 %v2434_v7 }
  0x1b   :  { %1594 = vmatprep.subr.bf16.mxu0 %v2437_v10  ;;  %1624 = vmatpush1.bf16.msra.mxu1 %v2482_v31 }
  0x1c   :  { %1626 = vmatprep.subr.bf16.mxu1 %v2485_v32 }
  0x1e   :  { %1596 = vmatpush1.bf16.msra.mxu0 %v2470_v24 }
  0x1f   :  { %1598 = vmatprep.subr.bf16.mxu0 %v2473_v27  ;;  %1628 = vmatpush1.bf16.msra.mxu1 %v2504_v40 }
  0x20   :  { %1630 = vmatprep.subr.bf16.mxu1 %v2507_v41 }
  0x22   :  { %1600 = vmatpush1.bf16.msra.mxu0 %v2500_v39 }
  0x23   :  { %1634 = vmatprep.subr.bf16.mxu0 %v2242_v4  ;;  %1632 = vmatpush1.bf16.msra.mxu1 %v2517_v47 }
  0x24   :  { %1666 = vmatprep.subr.bf16.mxu1 %v2294_v22 }
  0x25   :  { %154 = vmatmul.mubr.f32.vlgmr.msra.gmra.mrb[0].mxu0 %v2210_v3 }
  0x26   :  { %1636 = vmatpush1.bf16.msra.mxu0 %v2253_v8  ;;  %329 = vmatprep.mubr.f32.mxu0 %v2210_v3 }
  0x27   :  { %1638 = vmatprep.subr.bf16.mxu0 %v2255_v9  ;;  %225 = vmatmul.mubr.f32.vlgmr.msra.gmra.mrb[0].mxu1 %v2210_v3 }
  0x28   :  { %1668 = vmatpush1.bf16.msra.mxu1 %v2302_v25  ;;  %400 = vmatprep.mubr.f32.mxu1 %v2210_v3 }
  0x29   :  { %1670 = vmatprep.subr.bf16.mxu1 %v2327_v33 }
  0x2a   :  { %1640 = vmatpush1.bf16.msra.mxu0 %v2271_v14 }
  0x2b   :  { %1642 = vmatprep.subr.bf16.mxu0 %v2280_v17 }
  0x2c   :  { %1672 = vmatpush1.bf16.msra.mxu1 %v2338_v37 }
  0x2d   :  { %1674 = vmatprep.subr.bf16.mxu1 %v2362_v45 }
  0x2e   :  { %1644 = vmatpush1.bf16.msra.mxu0 %v2305_v26 }
  0x2f   :  { %1646 = vmatprep.subr.bf16.mxu0 %v2318_v30 }
  0x30   :  { %1676 = vmatpush1.bf16.msra.mxu1 %v2371_v48 }
  0x31   :  { %1678 = vmatprep.subr.bf16.mxu1 %v2383_v52 }
  0x32   :  { %1648 = vmatpush1.bf16.msra.mxu0 %v2354_v42 }
  0x33   :  { %1650 = vmatprep.subr.bf16.mxu0 %v2365_v46 }
  0x34   :  { %1680 = vmatpush1.bf16.msra.mxu1 %v2413_v62 }
  0x35   :  { %1682 = vmatprep.subr.bf16.mxu1 %v2419_v0 }
  0x36   :  { %1652 = vmatpush1.bf16.msra.mxu0 %v2392_v55 }
  0x37   :  { %1654 = vmatprep.subr.bf16.mxu0 %v2401_v58 }
  0x38   :  { %1684 = vmatpush1.bf16.msra.mxu1 %v2449_v15 }
  0x39   :  { %1686 = vmatprep.subr.bf16.mxu1 %v2455_v18 }
  0x3a   :  { %1656 = vmatpush1.bf16.msra.mxu0 %v2434_v7 }
  0x3b   :  { %1658 = vmatprep.subr.bf16.mxu0 %v2437_v10 }
  0x3c   :  { %1688 = vmatpush1.bf16.msra.mxu1 %v2482_v31 }
  0x3d   :  { %1690 = vmatprep.subr.bf16.mxu1 %v2485_v32 }
  0x3e   :  { %1660 = vmatpush1.bf16.msra.mxu0 %v2470_v24 }
  0x3f   :  { %1662 = vmatprep.subr.bf16.mxu0 %v2473_v27 }
  0x40   :  { %1692 = vmatpush1.bf16.msra.mxu1 %v2504_v40 }
  0x41   :  { %1694 = vmatprep.subr.bf16.mxu1 %v2507_v41 }
  0x42   :  { %1664 = vmatpush1.bf16.msra.mxu0 %v2500_v39 }
  0x43   :  { %1698 = vmatprep.subr.bf16.mxu0 %v2242_v4 }
  0x44   :  { %1696 = vmatpush1.bf16.msra.mxu1 %v2517_v47 }
  0x45   :  { %1730 = vmatprep.subr.bf16.mxu1 %v2294_v22 }
  0xf8   :  { %v155_v51 = vpop.f32.mrb[0].mxu0 }
  0xf9   :  { %v231_v53 = vadd.f32 %v155_v51, %v85_v49  ;;  %v157_v54 = vpop.f32.mrb[1].mxu0  ;;  %v1514_v49 = vld [vmem:[%s2909_s0 + $0x28] sm:$0xff] }
  0xfa   :  { %v232_v56 = vadd.f32 %v157_v54, %v86_v50  ;;  %v226_v61 = vpop.f32.mrb[0].mxu1 }
  0xfb   :  { %v1510_v57 = vmul.f32 -1.442695, %v231_v53  ;;  %v228_v63 = vpop.f32.mrb[1].mxu1  ;;  %v233_v6 = vadd.f32 %v226_v61, %v87_v2  ;;  %v1516_v61 = vld [vmem:[%s2909_s0 + $0x38] sm:$0xff] }
  0xfc   :  { %v1511_v59 = vmul.f32 -1.442695, %v232_v56  ;;  %v234_v1 = vadd.f32 %v228_v63, %v88_v60 }
  0xfd   :  { %2082 = vpow2.f32 %v1510_v57 }
  0xfe   :  { %2084 = vpow2.f32 %v1511_v59  ;;  %v1512_v5 = vmul.f32 -1.442695, %v234_v1  ;;  %v1515_v1 = vld [vmem:[%s2909_s0 + $0x30] sm:$0xff] }
 0x100   :  { %2086 = vpow2.f32 %v1512_v5 }
 0x101   :  { %2088 = vtanh.f32 %v233_v6 }
 0x107   :  { %v2083_v11 = vpop.eup %2082 }
 0x108   :  { %v2085_v12 = vpop.eup %2084  ;;  %v238_v13 = vadd.f32 1.0, %v2083_v11 }
 0x109   :  { %v244_v16 = vadd.f32 1.0, %v2085_v12 }
 0x10a   :  { %2090 = vrcp.f32 %v238_v13  ;;  %v2087_v19 = vpop.eup %2086 }
 0x10b   :  { %2092 = vrcp.f32 %v244_v16  ;;  %v2089_v20 = vpop.eup %2088  ;;  %v251_v23 = vadd.f32 1.0, %v2087_v19 }
 0x10d   :  { %2094 = vrcp.f32 %v251_v23 }
 0x114   :  { %v2091_v21 = vpop.eup %2090 }
 0x115   :  { %v2093_v28 = vpop.eup %2092  ;;  %v255_v29 = vmul.f32 %v2091_v21, %v2089_v20 }
 0x116   :  { %v254_v34 = vmul.f32 0.0, %v2093_v28 }
 0x117   :  { %v2095_v36 = vpop.eup %2094 }
 0x118   :  { %v2571_v35 = vadd.f32 %v255_v29, %v254_v34 }
 0x11a   :  { %2096 = vtanh.f32 %v2571_v35 }
 0x124   :  { %v2097_v38 = vpop.eup %2096 }
 0x125   :  { %v258_v43 = vmul.f32 %v2097_v38, %v2095_v36 }
 0x127   :  { %259 = vst [vmem:[%s2910_s2] sm:$0xff] %v258_v43  ;;  %330 = vmatmul.mubr.f32.vlgmr.msra.gmra.mrb[2].mxu0 %v258_v43  ;;  %401 = vmatmul.mubr.f32.vlgmr.msra.gmra.mrb[2].mxu1 %v258_v43 }
 0x128   :  { %1700 = vmatpush1.bf16.msra.mxu0 %v2253_v8  ;;  %1732 = vmatpush1.bf16.msra.mxu1 %v2302_v25 }
 0x129   :  { %1702 = vmatprep.subr.bf16.mxu0 %v2255_v9  ;;  %1734 = vmatprep.subr.bf16.mxu1 %v2327_v33 }
 0x12a   :  { %506 = vmatprep.mubr.f32.mxu0 %v2210_v3  ;;  %577 = vmatprep.mubr.f32.mxu1 %v2210_v3 }
 0x12c   :  { %1704 = vmatpush1.bf16.msra.mxu0 %v2271_v14  ;;  %1736 = vmatpush1.bf16.msra.mxu1 %v2338_v37 }
 0x12d   :  { %1706 = vmatprep.subr.bf16.mxu0 %v2280_v17  ;;  %1738 = vmatprep.subr.bf16.mxu1 %v2362_v45 }
 0x130   :  { %1708 = vmatpush1.bf16.msra.mxu0 %v2305_v26  ;;  %1740 = vmatpush1.bf16.msra.mxu1 %v2371_v48 }
 0x131   :  { %1710 = vmatprep.subr.bf16.mxu0 %v2318_v30  ;;  %1742 = vmatprep.subr.bf16.mxu1 %v2383_v52 }
 0x134   :  { %1712 = vmatpush1.bf16.msra.mxu0 %v2354_v42  ;;  %1744 = vmatpush1.bf16.msra.mxu1 %v2413_v62 }
 0x135   :  { %1714 = vmatprep.subr.bf16.mxu0 %v2365_v46  ;;  %1746 = vmatprep.subr.bf16.mxu1 %v2419_v0 }
 0x138   :  { %1716 = vmatpush1.bf16.msra.mxu0 %v2392_v55  ;;  %1748 = vmatpush1.bf16.msra.mxu1 %v2449_v15 }
 0x139   :  { %1718 = vmatprep.subr.bf16.mxu0 %v2401_v58  ;;  %1750 = vmatprep.subr.bf16.mxu1 %v2455_v18 }
 0x13c   :  { %1720 = vmatpush1.bf16.msra.mxu0 %v2434_v7  ;;  %1752 = vmatpush1.bf16.msra.mxu1 %v2482_v31 }
 0x13d   :  { %1722 = vmatprep.subr.bf16.mxu0 %v2437_v10  ;;  %1754 = vmatprep.subr.bf16.mxu1 %v2485_v32 }
 0x140   :  { %1724 = vmatpush1.bf16.msra.mxu0 %v2470_v24  ;;  %1756 = vmatpush1.bf16.msra.mxu1 %v2504_v40 }
 0x141   :  { %1726 = vmatprep.subr.bf16.mxu0 %v2473_v27  ;;  %1758 = vmatprep.subr.bf16.mxu1 %v2507_v41 }
 0x144   :  { %1728 = vmatpush1.bf16.msra.mxu0 %v2500_v39  ;;  %1760 = vmatpush1.bf16.msra.mxu1 %v2517_v47 }
 0x145   :  { %1762 = vmatprep.subr.bf16.mxu0 %v2242_v4  ;;  %1794 = vmatprep.subr.bf16.mxu1 %v2294_v22 }
 0x1fa   :  { %v331_v50 = vpop.f32.mrb[2].mxu0  ;;  %v402_v51 = vpop.f32.mrb[2].mxu1 }
 0x1fb   :  { %v407_v53 = vadd.f32 %v1513_v44, %v331_v50  ;;  %v333_v54 = vpop.f32.mrb[3].mxu0  ;;  %v404_v56 = vpop.f32.mrb[3].mxu1  ;;  %v409_v5 = vadd.f32 %v1515_v1, %v402_v51  ;;  %v1522_v44 = vld [vmem:[%s2909_s0 + $0x48] sm:$0xff] }
 0x1fc   :  { %v408_v57 = vadd.f32 %v1514_v49, %v333_v54  ;;  %v410_v63 = vadd.f32 %v1516_v61, %v404_v56 }
 0x1fd   :  { %v1517_v59 = vmul.f32 -1.442695, %v407_v53 }
 0x1fe   :  { %v1518_v60 = vmul.f32 -1.442695, %v408_v57  ;;  %v1519_v2 = vmul.f32 -1.442695, %v410_v63  ;;  %v1523_v63 = vld [vmem:[%s2909_s0 + $0x50] sm:$0xff] }
 0x1ff   :  { %2098 = vpow2.f32 %v1517_v59 }
 0x200   :  { %2100 = vpow2.f32 %v1518_v60  ;;  %v1524_v60 = vld [vmem:[%s2909_s0 + $0x58] sm:$0xff] }
 0x201   :  { %2102 = vpow2.f32 %v1519_v2 }
 0x202   :  { %2104 = vtanh.f32 %v409_v5 }
 0x209   :  { %v2099_v6 = vpop.eup %2098 }
 0x20a   :  { %v2101_v11 = vpop.eup %2100  ;;  %v414_v12 = vadd.f32 1.0, %v2099_v6 }
 0x20b   :  { %v420_v13 = vadd.f32 1.0, %v2101_v11  ;;  %v2103_v16 = vpop.eup %2102 }
 0x20c   :  { %2106 = vrcp.f32 %v414_v12  ;;  %v2105_v19 = vpop.eup %2104  ;;  %v427_v28 = vadd.f32 1.0, %v2103_v16 }
 0x20d   :  { %2108 = vrcp.f32 %v420_v13 }
 0x20e   :  { %2110 = vrcp.f32 %v427_v28 }
 0x216   :  { %v2107_v20 = vpop.eup %2106 }
 0x217   :  { %v2109_v21 = vpop.eup %2108  ;;  %v431_v23 = vmul.f32 %v2107_v20, %v2105_v19 }
 0x218   :  { %v430_v29 = vmul.f32 %v2109_v21, %v2571_v35  ;;  %v2111_v36 = vpop.eup %2110  ;;  %v1521_v35 = vld [vmem:[%s2909_s0 + $0x40] sm:$0xff] }
 0x21a   :  { %v2624_v34 = vadd.f32 %v431_v23, %v430_v29 }
 0x21c   :  { %2112 = vtanh.f32 %v2624_v34 }
 0x226   :  { %v2113_v38 = vpop.eup %2112 }
 0x227   :  { %v434_v43 = vmul.f32 %v2113_v38, %v2111_v36 }
 0x229   :  { %1520 = vst [vmem:[%s2910_s2 + $0x8] sm:$0xff] %v434_v43  ;;  %507 = vmatmul.mubr.f32.vlgmr.msra.gmra.mrb[4].mxu0 %v434_v43  ;;  %578 = vmatmul.mubr.f32.vlgmr.msra.gmra.mrb[4].mxu1 %v434_v43 }
 0x22a   :  { %1764 = vmatpush1.bf16.msra.mxu0 %v2253_v8  ;;  %1796 = vmatpush1.bf16.msra.mxu1 %v2302_v25 }
 0x22b   :  { %1766 = vmatprep.subr.bf16.mxu0 %v2255_v9  ;;  %1798 = vmatprep.subr.bf16.mxu1 %v2327_v33 }
 0x22c   :  { %683 = vmatprep.mubr.f32.mxu0 %v2210_v3  ;;  %754 = vmatprep.mubr.f32.mxu1 %v2210_v3 }
 0x22e   :  { %1768 = vmatpush1.bf16.msra.mxu0 %v2271_v14  ;;  %1800 = vmatpush1.bf16.msra.mxu1 %v2338_v37 }
 0x22f   :  { %1770 = vmatprep.subr.bf16.mxu0 %v2280_v17  ;;  %1802 = vmatprep.subr.bf16.mxu1 %v2362_v45 }
 0x232   :  { %1772 = vmatpush1.bf16.msra.mxu0 %v2305_v26  ;;  %1804 = vmatpush1.bf16.msra.mxu1 %v2371_v48 }
 0x233   :  { %1774 = vmatprep.subr.bf16.mxu0 %v2318_v30  ;;  %1806 = vmatprep.subr.bf16.mxu1 %v2383_v52 }
 0x236   :  { %1776 = vmatpush1.bf16.msra.mxu0 %v2354_v42  ;;  %1808 = vmatpush1.bf16.msra.mxu1 %v2413_v62 }
 0x237   :  { %1778 = vmatprep.subr.bf16.mxu0 %v2365_v46  ;;  %1810 = vmatprep.subr.bf16.mxu1 %v2419_v0 }
 0x23a   :  { %1780 = vmatpush1.bf16.msra.mxu0 %v2392_v55  ;;  %1812 = vmatpush1.bf16.msra.mxu1 %v2449_v15 }
 0x23b   :  { %1782 = vmatprep.subr.bf16.mxu0 %v2401_v58  ;;  %1814 = vmatprep.subr.bf16.mxu1 %v2455_v18 }
 0x23e   :  { %1784 = vmatpush1.bf16.msra.mxu0 %v2434_v7  ;;  %1816 = vmatpush1.bf16.msra.mxu1 %v2482_v31 }
 0x23f   :  { %1786 = vmatprep.subr.bf16.mxu0 %v2437_v10  ;;  %1818 = vmatprep.subr.bf16.mxu1 %v2485_v32 }
 0x242   :  { %1788 = vmatpush1.bf16.msra.mxu0 %v2470_v24  ;;  %1820 = vmatpush1.bf16.msra.mxu1 %v2504_v40 }
 0x243   :  { %1790 = vmatprep.subr.bf16.mxu0 %v2473_v27  ;;  %1822 = vmatprep.subr.bf16.mxu1 %v2507_v41 }
 0x246   :  { %1792 = vmatpush1.bf16.msra.mxu0 %v2500_v39  ;;  %1824 = vmatpush1.bf16.msra.mxu1 %v2517_v47 }
 0x247   :  { %1826 = vmatprep.subr.bf16.mxu0 %v2242_v4  ;;  %1858 = vmatprep.subr.bf16.mxu1 %v2294_v22 }
 0x2fc   :  { %v508_v49 = vpop.f32.mrb[4].mxu0  ;;  %v579_v50 = vpop.f32.mrb[4].mxu1 }
 0x2fd   :  { %v584_v51 = vadd.f32 %v1521_v35, %v508_v49  ;;  %v510_v53 = vpop.f32.mrb[5].mxu0  ;;  %v581_v54 = vpop.f32.mrb[5].mxu1  ;;  %v586_v2 = vadd.f32 %v1523_v63, %v579_v50  ;;  %v1530_v35 = vld [vmem:[%s2909_s0 + $0x68] sm:$0xff] }
 0x2fe   :  { %v585_v56 = vadd.f32 %v1522_v44, %v510_v53  ;;  %v587_v61 = vadd.f32 %v1524_v60, %v581_v54 }
 0x2ff   :  { %v1525_v57 = vmul.f32 -1.442695, %v584_v51 }
 0x300   :  { %v1526_v59 = vmul.f32 -1.442695, %v585_v56  ;;  %v1527_v1 = vmul.f32 -1.442695, %v587_v61  ;;  %v1531_v61 = vld [vmem:[%s2909_s0 + $0x70] sm:$0xff] }
 0x301   :  { %2114 = vpow2.f32 %v1525_v57 }
 0x302   :  { %2116 = vpow2.f32 %v1526_v59  ;;  %v1532_v59 = vld [vmem:[%s2909_s0 + $0x78] sm:$0xff] }
 0x303   :  { %2118 = vpow2.f32 %v1527_v1 }
 0x304   :  { %2120 = vtanh.f32 %v586_v2 }
 0x30b   :  { %v2115_v5 = vpop.eup %2114 }
 0x30c   :  { %v2117_v6 = vpop.eup %2116  ;;  %v591_v11 = vadd.f32 1.0, %v2115_v5 }
 0x30d   :  { %v597_v12 = vadd.f32 1.0, %v2117_v6  ;;  %v2119_v13 = vpop.eup %2118 }
 0x30e   :  { %2122 = vrcp.f32 %v591_v11  ;;  %v2121_v16 = vpop.eup %2120  ;;  %v604_v23 = vadd.f32 1.0, %v2119_v13 }
 0x30f   :  { %2124 = vrcp.f32 %v597_v12 }
 0x310   :  { %2126 = vrcp.f32 %v604_v23 }
 0x318   :  { %v2123_v19 = vpop.eup %2122 }
 0x319   :  { %v2125_v20 = vpop.eup %2124  ;;  %v608_v21 = vmul.f32 %v2123_v19, %v2121_v16 }
 0x31a   :  { %v607_v28 = vmul.f32 %v2125_v20, %v2624_v34  ;;  %v2127_v36 = vpop.eup %2126  ;;  %v1529_v34 = vld [vmem:[%s2909_s0 + $0x60] sm:$0xff] }
 0x31c   :  { %v2677_v29 = vadd.f32 %v608_v21, %v607_v28 }
 0x31e   :  { %2128 = vtanh.f32 %v2677_v29 }
 0x328   :  { %v2129_v38 = vpop.eup %2128 }
 0x329   :  { %v611_v43 = vmul.f32 %v2129_v38, %v2127_v36 }
 0x32b   :  { %1528 = vst [vmem:[%s2910_s2 + $0x10] sm:$0xff] %v611_v43  ;;  %684 = vmatmul.mubr.f32.vlgmr.msra.gmra.mrb[6].mxu0 %v611_v43  ;;  %755 = vmatmul.mubr.f32.vlgmr.msra.gmra.mrb[6].mxu1 %v611_v43 }
 0x32c   :  { %1828 = vmatpush1.bf16.msra.mxu0 %v2253_v8  ;;  %1860 = vmatpush1.bf16.msra.mxu1 %v2302_v25 }
 0x32d   :  { %1830 = vmatprep.subr.bf16.mxu0 %v2255_v9  ;;  %1862 = vmatprep.subr.bf16.mxu1 %v2327_v33 }
 0x32e   :  { %860 = vmatprep.mubr.f32.mxu0 %v2210_v3  ;;  %931 = vmatprep.mubr.f32.mxu1 %v2210_v3 }
 0x330   :  { %1832 = vmatpush1.bf16.msra.mxu0 %v2271_v14  ;;  %1864 = vmatpush1.bf16.msra.mxu1 %v2338_v37 }
 0x331   :  { %1834 = vmatprep.subr.bf16.mxu0 %v2280_v17  ;;  %1866 = vmatprep.subr.bf16.mxu1 %v2362_v45 }
 0x334   :  { %1836 = vmatpush1.bf16.msra.mxu0 %v2305_v26  ;;  %1868 = vmatpush1.bf16.msra.mxu1 %v2371_v48 }
 0x335   :  { %1838 = vmatprep.subr.bf16.mxu0 %v2318_v30  ;;  %1870 = vmatprep.subr.bf16.mxu1 %v2383_v52 }
 0x338   :  { %1840 = vmatpush1.bf16.msra.mxu0 %v2354_v42  ;;  %1872 = vmatpush1.bf16.msra.mxu1 %v2413_v62 }
 0x339   :  { %1842 = vmatprep.subr.bf16.mxu0 %v2365_v46  ;;  %1874 = vmatprep.subr.bf16.mxu1 %v2419_v0 }
 0x33c   :  { %1844 = vmatpush1.bf16.msra.mxu0 %v2392_v55  ;;  %1876 = vmatpush1.bf16.msra.mxu1 %v2449_v15 }
 0x33d   :  { %1846 = vmatprep.subr.bf16.mxu0 %v2401_v58  ;;  %1878 = vmatprep.subr.bf16.mxu1 %v2455_v18 }
 0x340   :  { %1848 = vmatpush1.bf16.msra.mxu0 %v2434_v7  ;;  %1880 = vmatpush1.bf16.msra.mxu1 %v2482_v31 }
 0x341   :  { %1850 = vmatprep.subr.bf16.mxu0 %v2437_v10  ;;  %1882 = vmatprep.subr.bf16.mxu1 %v2485_v32 }
 0x344   :  { %1852 = vmatpush1.bf16.msra.mxu0 %v2470_v24  ;;  %1884 = vmatpush1.bf16.msra.mxu1 %v2504_v40 }
 0x345   :  { %1854 = vmatprep.subr.bf16.mxu0 %v2473_v27  ;;  %1886 = vmatprep.subr.bf16.mxu1 %v2507_v41 }
 0x348   :  { %1856 = vmatpush1.bf16.msra.mxu0 %v2500_v39  ;;  %1888 = vmatpush1.bf16.msra.mxu1 %v2517_v47 }
 0x349   :  { %1890 = vmatprep.subr.bf16.mxu0 %v2242_v4  ;;  %1922 = vmatprep.subr.bf16.mxu1 %v2294_v22 }
 0x3fe   :  { %v685_v44 = vpop.f32.mrb[6].mxu0  ;;  %v756_v49 = vpop.f32.mrb[6].mxu1 }
 0x3ff   :  { %v761_v50 = vadd.f32 %v1529_v34, %v685_v44  ;;  %v687_v51 = vpop.f32.mrb[7].mxu0  ;;  %v758_v53 = vpop.f32.mrb[7].mxu1  ;;  %v763_v1 = vadd.f32 %v1531_v61, %v756_v49  ;;  %v1538_v34 = vld [vmem:[%s2909_s0 + $0x88] sm:$0xff] }
 0x400   :  { %v762_v54 = vadd.f32 %v1530_v35, %v687_v51  ;;  %v764_v60 = vadd.f32 %v1532_v59, %v758_v53 }
 0x401   :  { %v1533_v56 = vmul.f32 -1.442695, %v761_v50 }
 0x402   :  { %v1534_v57 = vmul.f32 -1.442695, %v762_v54  ;;  %v1535_v63 = vmul.f32 -1.442695, %v764_v60  ;;  %v1539_v60 = vld [vmem:[%s2909_s0 + $0x90] sm:$0xff] }
 0x403   :  { %2130 = vpow2.f32 %v1533_v56 }
 0x404   :  { %2132 = vpow2.f32 %v1534_v57  ;;  %v1540_v57 = vld [vmem:[%s2909_s0 + $0x98] sm:$0xff] }
 0x405   :  { %2134 = vpow2.f32 %v1535_v63 }
 0x406   :  { %2136 = vtanh.f32 %v763_v1 }
 0x40d   :  { %v2131_v2 = vpop.eup %2130 }
 0x40e   :  { %v2133_v5 = vpop.eup %2132  ;;  %v768_v6 = vadd.f32 1.0, %v2131_v2 }
 0x40f   :  { %v774_v11 = vadd.f32 1.0, %v2133_v5  ;;  %v2135_v12 = vpop.eup %2134 }
 0x410   :  { %2138 = vrcp.f32 %v768_v6  ;;  %v2137_v13 = vpop.eup %2136  ;;  %v781_v21 = vadd.f32 1.0, %v2135_v12 }
 0x411   :  { %2140 = vrcp.f32 %v774_v11 }
 0x412   :  { %2142 = vrcp.f32 %v781_v21 }
 0x41a   :  { %v2139_v16 = vpop.eup %2138 }
 0x41b   :  { %v2141_v19 = vpop.eup %2140  ;;  %v785_v20 = vmul.f32 %v2139_v16, %v2137_v13 }
 0x41c   :  { %v784_v23 = vmul.f32 %v2141_v19, %v2677_v29  ;;  %v2143_v36 = vpop.eup %2142  ;;  %v1537_v29 = vld [vmem:[%s2909_s0 + $0x80] sm:$0xff] }
 0x41e   :  { %v2730_v28 = vadd.f32 %v785_v20, %v784_v23 }
 0x420   :  { %2144 = vtanh.f32 %v2730_v28 }
 0x42a   :  { %v2145_v38 = vpop.eup %2144 }
 0x42b   :  { %v788_v43 = vmul.f32 %v2145_v38, %v2143_v36 }
 0x42d   :  { %1536 = vst [vmem:[%s2910_s2 + $0x18] sm:$0xff] %v788_v43  ;;  %861 = vmatmul.mubr.f32.vlgmr.msra.gmra.mrb[8].mxu0 %v788_v43  ;;  %932 = vmatmul.mubr.f32.vlgmr.msra.gmra.mrb[8].mxu1 %v788_v43 }
 0x42e   :  { %1892 = vmatpush1.bf16.msra.mxu0 %v2253_v8  ;;  %1924 = vmatpush1.bf16.msra.mxu1 %v2302_v25 }
 0x42f   :  { %1894 = vmatprep.subr.bf16.mxu0 %v2255_v9  ;;  %1926 = vmatprep.subr.bf16.mxu1 %v2327_v33 }
 0x430   :  { %1037 = vmatprep.mubr.f32.mxu0 %v2210_v3  ;;  %1108 = vmatprep.mubr.f32.mxu1 %v2210_v3 }
 0x432   :  { %1896 = vmatpush1.bf16.msra.mxu0 %v2271_v14  ;;  %1928 = vmatpush1.bf16.msra.mxu1 %v2338_v37 }
 0x433   :  { %1898 = vmatprep.subr.bf16.mxu0 %v2280_v17  ;;  %1930 = vmatprep.subr.bf16.mxu1 %v2362_v45 }
 0x436   :  { %1900 = vmatpush1.bf16.msra.mxu0 %v2305_v26  ;;  %1932 = vmatpush1.bf16.msra.mxu1 %v2371_v48 }
 0x437   :  { %1902 = vmatprep.subr.bf16.mxu0 %v2318_v30  ;;  %1934 = vmatprep.subr.bf16.mxu1 %v2383_v52 }
 0x43a   :  { %1904 = vmatpush1.bf16.msra.mxu0 %v2354_v42  ;;  %1936 = vmatpush1.bf16.msra.mxu1 %v2413_v62 }
 0x43b   :  { %1906 = vmatprep.subr.bf16.mxu0 %v2365_v46  ;;  %1938 = vmatprep.subr.bf16.mxu1 %v2419_v0 }
 0x43e   :  { %1908 = vmatpush1.bf16.msra.mxu0 %v2392_v55  ;;  %1940 = vmatpush1.bf16.msra.mxu1 %v2449_v15 }
 0x43f   :  { %1910 = vmatprep.subr.bf16.mxu0 %v2401_v58  ;;  %1942 = vmatprep.subr.bf16.mxu1 %v2455_v18 }
 0x442   :  { %1912 = vmatpush1.bf16.msra.mxu0 %v2434_v7  ;;  %1944 = vmatpush1.bf16.msra.mxu1 %v2482_v31 }
 0x443   :  { %1914 = vmatprep.subr.bf16.mxu0 %v2437_v10  ;;  %1946 = vmatprep.subr.bf16.mxu1 %v2485_v32 }
 0x446   :  { %1916 = vmatpush1.bf16.msra.mxu0 %v2470_v24  ;;  %1948 = vmatpush1.bf16.msra.mxu1 %v2504_v40 }
 0x447   :  { %1918 = vmatprep.subr.bf16.mxu0 %v2473_v27  ;;  %1950 = vmatprep.subr.bf16.mxu1 %v2507_v41 }
 0x44a   :  { %1920 = vmatpush1.bf16.msra.mxu0 %v2500_v39  ;;  %1952 = vmatpush1.bf16.msra.mxu1 %v2517_v47 }
 0x44b   :  { %1954 = vmatprep.subr.bf16.mxu0 %v2242_v4  ;;  %1986 = vmatprep.subr.bf16.mxu1 %v2294_v22 }
 0x500   :  { %v862_v35 = vpop.f32.mrb[8].mxu0  ;;  %v933_v44 = vpop.f32.mrb[8].mxu1 }
 0x501   :  { %v938_v49 = vadd.f32 %v1537_v29, %v862_v35  ;;  %v864_v50 = vpop.f32.mrb[9].mxu0  ;;  %v935_v51 = vpop.f32.mrb[9].mxu1  ;;  %v940_v63 = vadd.f32 %v1539_v60, %v933_v44  ;;  %v1546_v29 = vld [vmem:[%s2909_s0 + $0xa8] sm:$0xff] }
 0x502   :  { %v939_v53 = vadd.f32 %v1538_v34, %v864_v50  ;;  %v941_v59 = vadd.f32 %v1540_v57, %v935_v51 }
 0x503   :  { %v1541_v54 = vmul.f32 -1.442695, %v938_v49 }
 0x504   :  { %v1542_v56 = vmul.f32 -1.442695, %v939_v53  ;;  %v1543_v61 = vmul.f32 -1.442695, %v941_v59 }
 0x505   :  { %2146 = vpow2.f32 %v1541_v54 }
 0x506   :  { %2148 = vpow2.f32 %v1542_v56  ;;  %v1547_v56 = vld [vmem:[%s2909_s0 + $0xb0] sm:$0xff] }
 0x507   :  { %2150 = vpow2.f32 %v1543_v61 }
 0x508   :  { %2152 = vtanh.f32 %v940_v63 }
 0x50f   :  { %v2147_v1 = vpop.eup %2146 }
 0x510   :  { %v2149_v2 = vpop.eup %2148  ;;  %v945_v5 = vadd.f32 1.0, %v2147_v1 }
 0x511   :  { %v951_v6 = vadd.f32 1.0, %v2149_v2  ;;  %v2151_v11 = vpop.eup %2150 }
 0x512   :  { %2154 = vrcp.f32 %v945_v5  ;;  %v2153_v12 = vpop.eup %2152  ;;  %v958_v20 = vadd.f32 1.0, %v2151_v11 }
 0x513   :  { %2156 = vrcp.f32 %v951_v6 }
 0x514   :  { %2158 = vrcp.f32 %v958_v20 }
 0x51c   :  { %v2155_v13 = vpop.eup %2154 }
 0x51d   :  { %v2157_v16 = vpop.eup %2156  ;;  %v962_v19 = vmul.f32 %v2155_v13, %v2153_v12 }
 0x51e   :  { %v961_v21 = vmul.f32 %v2157_v16, %v2730_v28  ;;  %v2159_v36 = vpop.eup %2158  ;;  %v1545_v28 = vld [vmem:[%s2909_s0 + $0xa0] sm:$0xff] }
 0x520   :  { %v2783_v23 = vadd.f32 %v962_v19, %v961_v21 }
 0x522   :  { %2160 = vtanh.f32 %v2783_v23 }
 0x52c   :  { %v2161_v38 = vpop.eup %2160 }
 0x52d   :  { %v965_v43 = vmul.f32 %v2161_v38, %v2159_v36 }
 0x52f   :  { %1544 = vst [vmem:[%s2910_s2 + $0x20] sm:$0xff] %v965_v43  ;;  %1038 = vmatmul.mubr.f32.vlgmr.msra.gmra.mrb[10].mxu0 %v965_v43  ;;  %1109 = vmatmul.mubr.f32.vlgmr.msra.gmra.mrb[10].mxu1 %v965_v43 }
 0x530   :  { %1956 = vmatpush1.bf16.msra.mxu0 %v2253_v8  ;;  %1988 = vmatpush1.bf16.msra.mxu1 %v2302_v25 }
 0x531   :  { %1958 = vmatprep.subr.bf16.mxu0 %v2255_v9  ;;  %1990 = vmatprep.subr.bf16.mxu1 %v2327_v33 }
 0x532   :  { %1214 = vmatprep.mubr.f32.mxu0 %v2210_v3  ;;  %1285 = vmatprep.mubr.f32.mxu1 %v2210_v3 }
 0x534   :  { %1960 = vmatpush1.bf16.msra.mxu0 %v2271_v14  ;;  %1992 = vmatpush1.bf16.msra.mxu1 %v2338_v37 }
 0x535   :  { %1962 = vmatprep.subr.bf16.mxu0 %v2280_v17  ;;  %1994 = vmatprep.subr.bf16.mxu1 %v2362_v45 }
 0x538   :  { %1964 = vmatpush1.bf16.msra.mxu0 %v2305_v26  ;;  %1996 = vmatpush1.bf16.msra.mxu1 %v2371_v48 }
 0x539   :  { %1966 = vmatprep.subr.bf16.mxu0 %v2318_v30  ;;  %1998 = vmatprep.subr.bf16.mxu1 %v2383_v52 }
 0x53c   :  { %1968 = vmatpush1.bf16.msra.mxu0 %v2354_v42  ;;  %2000 = vmatpush1.bf16.msra.mxu1 %v2413_v62 }
 0x53d   :  { %1970 = vmatprep.subr.bf16.mxu0 %v2365_v46  ;;  %2002 = vmatprep.subr.bf16.mxu1 %v2419_v0 }
 0x540   :  { %1972 = vmatpush1.bf16.msra.mxu0 %v2392_v55  ;;  %2004 = vmatpush1.bf16.msra.mxu1 %v2449_v15 }
 0x541   :  { %1974 = vmatprep.subr.bf16.mxu0 %v2401_v58  ;;  %2006 = vmatprep.subr.bf16.mxu1 %v2455_v18 }
 0x544   :  { %1976 = vmatpush1.bf16.msra.mxu0 %v2434_v7  ;;  %2008 = vmatpush1.bf16.msra.mxu1 %v2482_v31 }
 0x545   :  { %1978 = vmatprep.subr.bf16.mxu0 %v2437_v10  ;;  %2010 = vmatprep.subr.bf16.mxu1 %v2485_v32 }
 0x548   :  { %1980 = vmatpush1.bf16.msra.mxu0 %v2470_v24  ;;  %2012 = vmatpush1.bf16.msra.mxu1 %v2504_v40 }
 0x549   :  { %1982 = vmatprep.subr.bf16.mxu0 %v2473_v27  ;;  %2014 = vmatprep.subr.bf16.mxu1 %v2507_v41 }
 0x54c   :  { %1984 = vmatpush1.bf16.msra.mxu0 %v2500_v39  ;;  %2016 = vmatpush1.bf16.msra.mxu1 %v2517_v47 }
 0x54d   :  { %2018 = vmatprep.subr.bf16.mxu0 %v2242_v4  ;;  %2050 = vmatprep.subr.bf16.mxu1 %v2294_v22  ;;  %v1548_v4 = vld [vmem:[%s2909_s0 + $0xb8] sm:$0xff] }
 0x602   :  { %v1039_v34 = vpop.f32.mrb[10].mxu0  ;;  %v1110_v35 = vpop.f32.mrb[10].mxu1 }
 0x603   :  { %v1115_v44 = vadd.f32 %v1545_v28, %v1039_v34  ;;  %v1041_v49 = vpop.f32.mrb[11].mxu0  ;;  %v1112_v50 = vpop.f32.mrb[11].mxu1  ;;  %v1117_v59 = vadd.f32 %v1547_v56, %v1110_v35 }
 0x604   :  { %v1116_v51 = vadd.f32 %v1546_v29, %v1041_v49  ;;  %v1118_v22 = vadd.f32 %v1548_v4, %v1112_v50  ;;  %v1564_v50 = vld [vmem:[%s2909_s0 + $0xf8] sm:$0xff] }
 0x605   :  { %v1549_v53 = vmul.f32 -1.442695, %v1115_v44 }
 0x606   :  { %v1550_v54 = vmul.f32 -1.442695, %v1116_v51  ;;  %v1551_v57 = vmul.f32 -1.442695, %v1118_v22 }
 0x607   :  { %2162 = vpow2.f32 %v1549_v53  ;;  %v1563_v53 = vld [vmem:[%s2909_s0 + $0xf0] sm:$0xff] }
 0x608   :  { %2164 = vpow2.f32 %v1550_v54 }
 0x609   :  { %2166 = vpow2.f32 %v1551_v57 }
 0x60a   :  { %2168 = vtanh.f32 %v1117_v59 }
 0x611   :  { %v2163_v60 = vpop.eup %2162 }
 0x612   :  { %v2165_v61 = vpop.eup %2164  ;;  %v1122_v63 = vadd.f32 1.0, %v2163_v60 }
 0x613   :  { %v1128_v1 = vadd.f32 1.0, %v2165_v61  ;;  %v2167_v2 = vpop.eup %2166 }
 0x614   :  { %2170 = vrcp.f32 %v1122_v63  ;;  %v2169_v5 = vpop.eup %2168  ;;  %v1135_v13 = vadd.f32 1.0, %v2167_v2 }
 0x615   :  { %2172 = vrcp.f32 %v1128_v1 }
 0x616   :  { %2174 = vrcp.f32 %v1135_v13 }
 0x61e   :  { %v2171_v6 = vpop.eup %2170 }
 0x61f   :  { %v2173_v11 = vpop.eup %2172  ;;  %v1139_v12 = vmul.f32 %v2171_v6, %v2169_v5 }
 0x620   :  { %v1138_v16 = vmul.f32 %v2173_v11, %v2783_v23  ;;  %v2175_v20 = vpop.eup %2174  ;;  %v1562_v23 = vld [vmem:[%s2909_s0 + $0xe8] sm:$0xff] }
 0x622   :  { %v2836_v19 = vadd.f32 %v1139_v12, %v1138_v16 }
 0x624   :  { %2176 = vtanh.f32 %v2836_v19 }
 0x62e   :  { %v2177_v21 = vpop.eup %2176 }
 0x62f   :  { %v1142_v36 = vmul.f32 %v2177_v21, %v2175_v20 }
 0x631   :  { %1552 = vst [vmem:[%s2910_s2 + $0x28] sm:$0xff] %v1142_v36  ;;  %1215 = vmatmul.mubr.f32.vlgmr.msra.gmra.mrb[12].mxu0 %v1142_v36  ;;  %1286 = vmatmul.mubr.f32.vlgmr.msra.gmra.mrb[12].mxu1 %v1142_v36 }
 0x632   :  { %2020 = vmatpush1.bf16.msra.mxu0 %v2253_v8  ;;  %2052 = vmatpush1.bf16.msra.mxu1 %v2302_v25  ;;  %v1554_v8 = vld [vmem:[%s2909_s0 + $0xc8] sm:$0xff] }
 0x633   :  { %2022 = vmatprep.subr.bf16.mxu0 %v2255_v9  ;;  %2054 = vmatprep.subr.bf16.mxu1 %v2327_v33 }
 0x634   :  { %1391 = vmatprep.mubr.f32.mxu0 %v2210_v3  ;;  %1462 = vmatprep.mubr.f32.mxu1 %v2210_v3  ;;  %v1553_v3 = vld [vmem:[%s2909_s0 + $0xc0] sm:$0xff] }
 0x636   :  { %2024 = vmatpush1.bf16.msra.mxu0 %v2271_v14  ;;  %2056 = vmatpush1.bf16.msra.mxu1 %v2338_v37 }
 0x637   :  { %2026 = vmatprep.subr.bf16.mxu0 %v2280_v17  ;;  %2058 = vmatprep.subr.bf16.mxu1 %v2362_v45 }
 0x63a   :  { %2028 = vmatpush1.bf16.msra.mxu0 %v2305_v26  ;;  %2060 = vmatpush1.bf16.msra.mxu1 %v2371_v48 }
 0x63b   :  { %2030 = vmatprep.subr.bf16.mxu0 %v2318_v30  ;;  %2062 = vmatprep.subr.bf16.mxu1 %v2383_v52 }
 0x63e   :  { %2032 = vmatpush1.bf16.msra.mxu0 %v2354_v42  ;;  %2064 = vmatpush1.bf16.msra.mxu1 %v2413_v62  ;;  %v1556_v42 = vld [vmem:[%s2909_s0 + $0xd8] sm:$0xff] }
 0x63f   :  { %2034 = vmatprep.subr.bf16.mxu0 %v2365_v46  ;;  %2066 = vmatprep.subr.bf16.mxu1 %v2419_v0  ;;  %v1555_v46 = vld [vmem:[%s2909_s0 + $0xd0] sm:$0xff] }
 0x642   :  { %2036 = vmatpush1.bf16.msra.mxu0 %v2392_v55  ;;  %2068 = vmatpush1.bf16.msra.mxu1 %v2449_v15 }
 0x643   :  { %2038 = vmatprep.subr.bf16.mxu0 %v2401_v58  ;;  %2070 = vmatprep.subr.bf16.mxu1 %v2455_v18 }
 0x646   :  { %2040 = vmatpush1.bf16.msra.mxu0 %v2434_v7  ;;  %2072 = vmatpush1.bf16.msra.mxu1 %v2482_v31 }
 0x647   :  { %2042 = vmatprep.subr.bf16.mxu0 %v2437_v10  ;;  %2074 = vmatprep.subr.bf16.mxu1 %v2485_v32 }
 0x64a   :  { %2044 = vmatpush1.bf16.msra.mxu0 %v2470_v24  ;;  %2076 = vmatpush1.bf16.msra.mxu1 %v2504_v40 }
 0x64b   :  { %2046 = vmatprep.subr.bf16.mxu0 %v2473_v27  ;;  %2078 = vmatprep.subr.bf16.mxu1 %v2507_v41 }
 0x64e   :  { %2048 = vmatpush1.bf16.msra.mxu0 %v2500_v39  ;;  %2080 = vmatpush1.bf16.msra.mxu1 %v2517_v47  ;;  %v1561_v47 = vld [vmem:[%s2909_s0 + $0xe0] sm:$0xff] }
 0x704   :  { %v1216_v9 = vpop.f32.mrb[12].mxu0  ;;  %v1287_v14 = vpop.f32.mrb[12].mxu1 }
 0x705   :  { %v1292_v17 = vadd.f32 %v1553_v3, %v1216_v9  ;;  %v1218_v25 = vpop.f32.mrb[13].mxu0  ;;  %v1289_v26 = vpop.f32.mrb[13].mxu1  ;;  %v1294_v52 = vadd.f32 %v1555_v46, %v1287_v14 }
 0x706   :  { %v1293_v30 = vadd.f32 %v1554_v8, %v1218_v25  ;;  %v1295_v45 = vadd.f32 %v1556_v42, %v1289_v26 }
 0x707   :  { %v1557_v33 = vmul.f32 -1.442695, %v1292_v17 }
 0x708   :  { %v1558_v37 = vmul.f32 -1.442695, %v1293_v30  ;;  %v1559_v48 = vmul.f32 -1.442695, %v1295_v45 }
 0x709   :  { %2178 = vpow2.f32 %v1557_v33 }
 0x70a   :  { %2180 = vpow2.f32 %v1558_v37 }
 0x70b   :  { %2182 = vpow2.f32 %v1559_v48 }
 0x70c   :  { %2184 = vtanh.f32 %v1294_v52 }
 0x713   :  { %v2179_v55 = vpop.eup %2178 }
 0x714   :  { %v2181_v58 = vpop.eup %2180  ;;  %v1299_v62 = vadd.f32 1.0, %v2179_v55 }
 0x715   :  { %v1305_v0 = vadd.f32 1.0, %v2181_v58  ;;  %v2183_v7 = vpop.eup %2182 }
 0x716   :  { %2186 = vrcp.f32 %v1299_v62  ;;  %v2185_v10 = vpop.eup %2184  ;;  %v1312_v27 = vadd.f32 1.0, %v2183_v7 }
 0x717   :  { %2188 = vrcp.f32 %v1305_v0 }
 0x718   :  { %2190 = vrcp.f32 %v1312_v27 }
 0x720   :  { %v2187_v15 = vpop.eup %2186 }
 0x721   :  { %v2189_v18 = vpop.eup %2188  ;;  %v1316_v24 = vmul.f32 %v2187_v15, %v2185_v10 }
 0x722   :  { %v1315_v31 = vmul.f32 %v2189_v18, %v2836_v19  ;;  %v2191_v39 = vpop.eup %2190 }
 0x724   :  { %v1317_v32 = vadd.f32 %v1316_v24, %v1315_v31 }
 0x726   :  { %2192 = vtanh.f32 %v1317_v32 }
 0x730   :  { %v2193_v40 = vpop.eup %2192 }
 0x731   :  { %v1319_v41 = vmul.f32 %v2193_v40, %v2191_v39 }
 0x733   :  { %1560 = vst [vmem:[%s2910_s2 + $0x30] sm:$0xff] %v1319_v41  ;;  %1392 = vmatmul.mubr.f32.vlgmr.msra.gmra.mrb[14].mxu0 %v1319_v41  ;;  %1463 = vmatmul.mubr.f32.vlgmr.msra.gmra.mrb[14].mxu1 %v1319_v41 }
 0x806   :  { %v1393_v38 = vpop.f32.mrb[14].mxu0  ;;  %v1464_v43 = vpop.f32.mrb[14].mxu1 }
 0x807   :  { %v1469_v28 = vadd.f32 %v1561_v47, %v1393_v38  ;;  %v1395_v29 = vpop.f32.mrb[15].mxu0  ;;  %v1466_v34 = vpop.f32.mrb[15].mxu1  ;;  %v1471_v4 = vadd.f32 %v1563_v53, %v1464_v43 }
 0x808   :  { %v1470_v35 = vadd.f32 %v1562_v23, %v1395_v29  ;;  %v1472_v51 = vadd.f32 %v1564_v50, %v1466_v34 }
 0x809   :  { %v1565_v44 = vmul.f32 -1.442695, %v1469_v28 }
 0x80a   :  { %v1566_v49 = vmul.f32 -1.442695, %v1470_v35  ;;  %v1567_v54 = vmul.f32 -1.442695, %v1472_v51 }
 0x80b   :  { %2194 = vpow2.f32 %v1565_v44 }
 0x80c   :  { %2196 = vpow2.f32 %v1566_v49 }
 0x80d   :  { %2198 = vpow2.f32 %v1567_v54 }
 0x80e   :  { %2200 = vtanh.f32 %v1471_v4 }
 0x815   :  { %v2195_v22 = vpop.eup %2194 }
 0x816   :  { %v2197_v56 = vpop.eup %2196  ;;  %v1476_v57 = vadd.f32 1.0, %v2195_v22 }
 0x817   :  { %v1482_v59 = vadd.f32 1.0, %v2197_v56  ;;  %v2199_v60 = vpop.eup %2198 }
 0x818   :  { %2202 = vrcp.f32 %v1476_v57  ;;  %v2201_v61 = vpop.eup %2200  ;;  %v1489_v5 = vadd.f32 1.0, %v2199_v60 }
 0x819   :  { %2204 = vrcp.f32 %v1482_v59 }
 0x81a   :  { %2206 = vrcp.f32 %v1489_v5 }
 0x822   :  { %v2203_v63 = vpop.eup %2202 }
 0x823   :  { %v2205_v1 = vpop.eup %2204  ;;  %v1493_v2 = vmul.f32 %v2203_v63, %v2201_v61 }
 0x824   :  { %v1492_v6 = vmul.f32 %v2205_v1, %v1317_v32  ;;  %v2207_v12 = vpop.eup %2206 }
 0x826   :  { %v1494_v11 = vadd.f32 %v1493_v2, %v1492_v6 }
 0x828   :  { %2208 = vtanh.f32 %v1494_v11  ;;  %1501 = vst [vmem:[%s2911_s3] sm:$0xff] %v1494_v11 }
 0x832   :  { %v2209_v13 = vpop.eup %2208 }
 0x833   :  { %v1496_v16 = vmul.f32 %v2209_v13, %v2207_v12 }
 0x835   :  { %1568 = vst [vmem:[%s2910_s2 + $0x38] sm:$0xff] %v1496_v16 }

</bundles_post_ra>
